<compile_context>
chip_gen: v7x
topology: tpu7x:2x2x1
jax: 0.10.0
libtpu: 0.0.40
codegen_flags: <defaults>
</compile_context>

<pallas_src>
import jax
import jax.numpy as jnp
from jax.experimental import pallas as pl
from jax.experimental.pallas import tpu as pltpu


def _global_attention_kernel(q_ref, ctx_ref, mask_ref, wa_ref, wcq_ref,
                             out_ref, attn_ref, wc_ref):
    # q_ref: (BBLK, D)  ctx_ref: (BBLK, S, D)  mask_ref: (BBLK, S) int32
    # wa_ref: (D, D)    wcq_ref: (2D, D)   (transposed nn.Linear weights)
    q = q_ref[...]                      # original query (also feeds W_query)
    ctx = ctx_ref[...]

    # 'general' alignment: project the query (MXU, M = BBLK rows).
    q_al = jnp.dot(q, wa_ref[...], preferred_element_type=jnp.float32)    # (BBLK, D)

    # align[b, s] = <context[b, s, :], q_al[b, :]>  (batched matvec).
    # A matvec would leave 127/128 MXU columns idle, so do it on the VPU:
    # broadcast-multiply + lane reduce (no transpose formed).
    align = jnp.sum(ctx * q_al[:, None, :], axis=-1)                      # (BBLK, S)

    # masked_fill(mask == 0, -inf) + numerically-stable softmax over S.
    align = jnp.where(mask_ref[...] != 0, align, -jnp.inf)
    align = align - jnp.max(align, axis=-1, keepdims=True)
    e = jnp.exp(align)
    # exact reciprocal keeps parity with the f32 reference softmax
    # (pl.reciprocal(..., approx=True) is the EUP knob if ~1e-3 rel err is ok).
    attn = e * pl.reciprocal(jnp.sum(e, axis=-1, keepdims=True))          # (BBLK, S)

    # weight_context[b, d] = sum_s attn[b, s] * context[b, s, d] (sublane reduce).
    wc = jnp.sum(attn[:, :, None] * ctx, axis=1)                          # (BBLK, D)

    # tanh(W_context(wc) + W_query(q)) as one K=2D MXU dot against the
    # pre-stacked (2D, D) weight (single matmul push/pop instead of two).
    cat = jnp.concatenate([wc, q], axis=-1)                               # (BBLK, 2D)
    out = jnp.tanh(jnp.dot(cat, wcq_ref[...],
                           preferred_element_type=jnp.float32))           # (BBLK, D)

    out_ref[...] = out
    attn_ref[...] = attn
    wc_ref[...] = wc


def _pick_batch_block(b):
    # Largest batch block that divides B and keeps the (8, 128) rule happy.
    for cand in (128, 64, 32, 16, 8):
        if b % cand == 0:
            return cand
    return b  # block == full dim is always legal


@jax.jit
def global_attention(query, context, context_mask,
                     w_align_t, w_context_t, w_query_t):
    """query (B, D), context (B, S, D), context_mask (B, S) (0 = masked out).
       w_*_t are the transposed nn.Linear weights, shape (D, D).
       For alignment_function='dot' pass an identity matrix as w_align_t."""
    B, D = query.shape
    S = context.shape[1]
    bblk = _pick_batch_block(B)

    mask = context_mask.astype(jnp.int32)
    # Stack the two output-projection weights so the kernel does one K=2D dot.
    w_cq = jnp.concatenate([w_context_t, w_query_t], axis=0)   # (2D, D)

    grid_spec = pltpu.PrefetchScalarGridSpec(
        num_scalar_prefetch=0,
        grid=(B // bblk,),
        in_specs=[
            pl.BlockSpec((bblk, D), lambda b: (b, 0)),
            pl.BlockSpec((bblk, S, D), lambda b: (b, 0, 0)),
            pl.BlockSpec((bblk, S), lambda b: (b, 0)),
            pl.BlockSpec((D, D), lambda b: (0, 0)),        # grid-invariant weight
            pl.BlockSpec((2 * D, D), lambda b: (0, 0)),    # grid-invariant weight
        ],
        out_specs=[
            pl.BlockSpec((bblk, D), lambda b: (b, 0)),
            pl.BlockSpec((bblk, S), lambda b: (b, 0)),
            pl.BlockSpec((bblk, D), lambda b: (b, 0)),
        ],
    )

    flops = (2 * B * D * D            # query projection
             + 2 * B * S * D * 2      # align + weight_context contractions
             + 2 * B * (2 * D) * D)   # fused output projection
    bytes_accessed = 4 * (B * D + B * S * D + B * S + 3 * D * D
                          + 2 * B * D + B * S)
    cost = pl.CostEstimate(flops=flops,
                           transcendentals=B * (S + D),
                           bytes_accessed=bytes_accessed)

    return pl.pallas_call(
        _global_attention_kernel,
        grid_spec=grid_spec,
        out_shape=[
            jax.ShapeDtypeStruct((B, D), jnp.float32),   # tanh(fused output)
            jax.ShapeDtypeStruct((B, S), jnp.float32),   # attention weights
            jax.ShapeDtypeStruct((B, D), jnp.float32),   # weight_context
        ],
        compiler_params=pltpu.CompilerParams(
            dimension_semantics=("parallel",)),          # shards across v7x TCs
        cost_estimate=cost,
    )(query, context, mask, w_align_t, w_cq)


def _reference(query, context, context_mask, w_align_t, w_context_t, w_query_t):
    """Pure-JAX reference mirroring the PyTorch forward ('general' alignment)."""
    hi = jax.lax.Precision.HIGHEST
    q_al = jnp.dot(query, w_align_t, precision=hi)
    align = jnp.einsum("bsd,bd->bs", context, q_al, precision=hi)
    align = jnp.where(context_mask != 0, align, -jnp.inf)
    attn = jax.nn.softmax(align, axis=-1)
    wc = jnp.einsum("bs,bsd->bd", attn, context, precision=hi)
    out = jnp.tanh(jnp.dot(wc, w_context_t, precision=hi)
                   + jnp.dot(query, w_query_t, precision=hi))
    return out, attn, wc


if __name__ == "__main__":
    B, S, D = 8, 128, 128    # batch, source length, hidden dim (lane-dense)

    key = jax.random.PRNGKey(0)
    ks = jax.random.split(key, 6)

    query = jax.random.normal(ks[0], (B, D), jnp.float32)
    context = jax.random.normal(ks[1], (B, S, D), jnp.float32)

    # Variable-length context mask (at least one valid position per row).
    lengths = jax.random.randint(ks[2], (B,), S // 2, S + 1)
    context_mask = (jnp.arange(S)[None, :] < lengths[:, None]).astype(jnp.int32)

    scale = 1.0 / jnp.sqrt(jnp.float32(D))
    # nn.Linear(D, D, bias=False).weight is (D, D); pass the transpose W.T.
    w_align_t = jax.random.normal(ks[3], (D, D), jnp.float32) * scale
    w_context_t = jax.random.normal(ks[4], (D, D), jnp.float32) * scale
    w_query_t = jax.random.normal(ks[5], (D, D), jnp.float32) * scale

    out, attn, wc = global_attention(query, context, context_mask,
                                     w_align_t, w_context_t, w_query_t)
    jax.block_until_ready((out, attn, wc))

    ref_out, ref_attn, ref_wc = _reference(query, context, context_mask,
                                           w_align_t, w_context_t, w_query_t)

    assert out.shape == (B, D) and attn.shape == (B, S) and wc.shape == (B, D)
    assert jnp.allclose(attn, ref_attn, atol=1e-4, rtol=1e-4)
    assert jnp.allclose(wc, ref_wc, atol=1e-4, rtol=1e-4)
    assert jnp.allclose(out, ref_out, atol=1e-4, rtol=1e-4)

    print("KERNEL_OK")
</pallas_src>

<mosaic_0001>
module attributes {stable_mosaic.version = 11 : i64} {
  func.func @_global_attention_kernel(%arg0: i32, %arg1: memref<8x128xf32, #tpu.memory_space<vmem>>, %arg2: memref<8x128x128xf32, #tpu.memory_space<vmem>>, %arg3: memref<8x128xi32, #tpu.memory_space<vmem>>, %arg4: memref<128x128xf32, #tpu.memory_space<vmem>>, %arg5: memref<256x128xf32, #tpu.memory_space<vmem>>, %arg6: memref<8x128xf32, #tpu.memory_space<vmem>>, %arg7: memref<8x128xf32, #tpu.memory_space<vmem>>, %arg8: memref<8x128xf32, #tpu.memory_space<vmem>>) attributes {dimension_semantics = [#tpu.dimension_semantics<parallel>], iteration_bounds = array<i64: 1>, scalar_prefetch = 0 : i64, scratch_operands = 0 : i64, tpu.core_type = #tpu.core_type<tc>, window_params = [{transform_indices = @transform_0, window_bounds = array<i64: 8, 128>}, {transform_indices = @transform_1, window_bounds = array<i64: 8, 128, 128>}, {transform_indices = @transform_2, window_bounds = array<i64: 8, 128>}, {pipeline_mode = #tpu.pipeline_mode<synchronous>, transform_indices = @transform_3, window_bounds = array<i64: 128, 128>}, {pipeline_mode = #tpu.pipeline_mode<synchronous>, transform_indices = @transform_4, window_bounds = array<i64: 256, 128>}, {transform_indices = @transform_5, window_bounds = array<i64: 8, 128>}, {transform_indices = @transform_6, window_bounds = array<i64: 8, 128>}, {transform_indices = @transform_7, window_bounds = array<i64: 8, 128>}]} {
    %c0 = arith.constant 0 : index
    %c0_0 = arith.constant 0 : index
    %0 = vector.load %arg1[%c0, %c0_0] : memref<8x128xf32, #tpu.memory_space<vmem>>, vector<8x128xf32>
    %c0_1 = arith.constant 0 : index
    %c0_2 = arith.constant 0 : index
    %c0_3 = arith.constant 0 : index
    %1 = vector.load %arg2[%c0_1, %c0_2, %c0_3] : memref<8x128x128xf32, #tpu.memory_space<vmem>>, vector<8x128x128xf32>
    %c0_4 = arith.constant 0 : index
    %c0_5 = arith.constant 0 : index
    %2 = vector.load %arg4[%c0_4, %c0_5] : memref<128x128xf32, #tpu.memory_space<vmem>>, vector<128x128xf32>
    %cst = arith.constant dense<0.000000e+00> : vector<8x128xf32>
    %3 = tpu.matmul %0, %2, %cst {dimension_numbers = #tpu.dot_dimension_numbers<[1], [0], [0], [1], [0, 0, 1, 1], [], []>} : vector<8x128xf32>, vector<128x128xf32>, vector<8x128xf32> -> vector<8x128xf32>
    %4 = vector.shape_cast %3 : vector<8x128xf32> to vector<8x1x128xf32>
    %5 = vector.broadcast %4 : vector<8x1x128xf32> to vector<8x128x128xf32>
    %6 = arith.mulf %1, %5 : vector<8x128x128xf32>
    %cst_6 = arith.constant dense<0.000000e+00> : vector<8x128xf32>
    %7 = vector.multi_reduction <add>, %6, %cst_6 [2] : vector<8x128x128xf32> to vector<8x128xf32>
    %c0_7 = arith.constant 0 : index
    %c0_8 = arith.constant 0 : index
    %8 = vector.load %arg3[%c0_7, %c0_8] : memref<8x128xi32, #tpu.memory_space<vmem>>, vector<8x128xi32>
    %c0_i32 = arith.constant 0 : i32
    %9 = vector.broadcast %c0_i32 : i32 to vector<8x128xi32>
    %10 = arith.cmpi ne, %8, %9 : vector<8x128xi32>
    %cst_9 = arith.constant 0xFF800000 : f32
    %11 = vector.broadcast %cst_9 : f32 to vector<8x128xf32>
    %12 = arith.select %10, %7, %11 : vector<8x128xi1>, vector<8x128xf32>
    %cst_10 = arith.constant dense<0xFF800000> : vector<8xf32>
    %13 = vector.multi_reduction <maximumf>, %12, %cst_10 [1] : vector<8x128xf32> to vector<8xf32>
    %14 = vector.shape_cast %13 : vector<8xf32> to vector<8x1xf32>
    %15 = vector.broadcast %14 : vector<8x1xf32> to vector<8x128xf32>
    %16 = arith.subf %12, %15 : vector<8x128xf32>
    %17 = math.exp %16 : vector<8x128xf32>
    %cst_11 = arith.constant dense<0.000000e+00> : vector<8xf32>
    %18 = vector.multi_reduction <add>, %17, %cst_11 [1] : vector<8x128xf32> to vector<8xf32>
    %19 = vector.shape_cast %18 : vector<8xf32> to vector<8x1xf32>
    %20 = tpu.reciprocal %19 : vector<8x1xf32> -> vector<8x1xf32>
    %21 = vector.broadcast %20 : vector<8x1xf32> to vector<8x128xf32>
    %22 = arith.mulf %17, %21 : vector<8x128xf32>
    %23 = vector.shape_cast %22 : vector<8x128xf32> to vector<8x128x1xf32>
    %24 = vector.broadcast %23 : vector<8x128x1xf32> to vector<8x128x128xf32>
    %25 = arith.mulf %24, %1 : vector<8x128x128xf32>
    %cst_12 = arith.constant dense<0.000000e+00> : vector<8x128xf32>
    %26 = vector.multi_reduction <add>, %25, %cst_12 [1] : vector<8x128x128xf32> to vector<8x128xf32>
    %27 = tpu.concatenate %26, %0 in 1 : vector<8x128xf32>, vector<8x128xf32> -> vector<8x256xf32>
    %c0_13 = arith.constant 0 : index
    %c0_14 = arith.constant 0 : index
    %28 = vector.load %arg5[%c0_13, %c0_14] : memref<256x128xf32, #tpu.memory_space<vmem>>, vector<256x128xf32>
    %cst_15 = arith.constant dense<0.000000e+00> : vector<8x128xf32>
    %29 = tpu.matmul %27, %28, %cst_15 {dimension_numbers = #tpu.dot_dimension_numbers<[1], [0], [0], [1], [0, 0, 1, 1], [], []>} : vector<8x256xf32>, vector<256x128xf32>, vector<8x128xf32> -> vector<8x128xf32>
    %30 = math.tanh %29 : vector<8x128xf32>
    %c0_16 = arith.constant 0 : index
    %c0_17 = arith.constant 0 : index
    %31 = vector.load %arg6[%c0_16, %c0_17] : memref<8x128xf32, #tpu.memory_space<vmem>>, vector<8x128xf32>
    tpu.vector_store %arg6[%c0_16, %c0_17], %30 {strides = array<i32>} : memref<8x128xf32, #tpu.memory_space<vmem>>, vector<8x128xf32>,
    %c0_18 = arith.constant 0 : index
    %c0_19 = arith.constant 0 : index
    %32 = vector.load %arg7[%c0_18, %c0_19] : memref<8x128xf32, #tpu.memory_space<vmem>>, vector<8x128xf32>
    tpu.vector_store %arg7[%c0_18, %c0_19], %22 {strides = array<i32>} : memref<8x128xf32, #tpu.memory_space<vmem>>, vector<8x128xf32>,
    %c0_20 = arith.constant 0 : index
    %c0_21 = arith.constant 0 : index
    %33 = vector.load %arg8[%c0_20, %c0_21] : memref<8x128xf32, #tpu.memory_space<vmem>>, vector<8x128xf32>
    tpu.vector_store %arg8[%c0_20, %c0_21], %26 {strides = array<i32>} : memref<8x128xf32, #tpu.memory_space<vmem>>, vector<8x128xf32>,
    return
  }
  func.func @transform_0(%arg0: i32) -> (i32, i32) {
    %c0_i32 = arith.constant 0 : i32
    %c0_i32_0 = arith.constant 0 : i32
    return %arg0, %c0_i32 : i32, i32
  }
  func.func @transform_1(%arg0: i32) -> (i32, i32, i32) {
    %c0_i32 = arith.constant 0 : i32
    %c0_i32_0 = arith.constant 0 : i32
    %c0_i32_1 = arith.constant 0 : i32
    return %arg0, %c0_i32, %c0_i32_0 : i32, i32, i32
  }
  func.func @transform_2(%arg0: i32) -> (i32, i32) {
    %c0_i32 = arith.constant 0 : i32
    %c0_i32_0 = arith.constant 0 : i32
    return %arg0, %c0_i32 : i32, i32
  }
  func.func @transform_3(%arg0: i32) -> (i32, i32) {
    %c0_i32 = arith.constant 0 : i32
    %c0_i32_0 = arith.constant 0 : i32
    %c0_i32_1 = arith.constant 0 : i32
    return %c0_i32, %c0_i32_0 : i32, i32
  }
  func.func @transform_4(%arg0: i32) -> (i32, i32) {
    %c0_i32 = arith.constant 0 : i32
    %c0_i32_0 = arith.constant 0 : i32
    %c0_i32_1 = arith.constant 0 : i32
    return %c0_i32, %c0_i32_0 : i32, i32
  }
  func.func @transform_5(%arg0: i32) -> (i32, i32) {
    %c0_i32 = arith.constant 0 : i32
    %c0_i32_0 = arith.constant 0 : i32
    return %arg0, %c0_i32 : i32, i32
  }
  func.func @transform_6(%arg0: i32) -> (i32, i32) {
    %c0_i32 = arith.constant 0 : i32
    %c0_i32_0 = arith.constant 0 : i32
    return %arg0, %c0_i32 : i32, i32
  }
  func.func @transform_7(%arg0: i32) -> (i32, i32) {
    %c0_i32 = arith.constant 0 : i32
    %c0_i32_0 = arith.constant 0 : i32
    return %arg0, %c0_i32 : i32, i32
  }
}

</mosaic_0001>

<bundles_post_ra>
// kernel: global_attention.1
= control target key start
LH: loop header
LB: loop body
LE: loop exit
PB: predicated region body
PF: predicated region fallthrough
CT: control target
= control target key end

     0   :  { %13 = vsyncpa [#allocation3], 0  ;;  %s4250_s0 = inlined_call_operand.vmem [shape: f32[8,128], index: 0, kind: input, shape index: {}]   ;;  %s4251_s1 = inlined_call_operand.hbm [shape: f32[8,128,128], index: 1, kind: input, shape index: {}]   ;;  %s4252_s2 = inlined_call_operand.vmem [shape: s32[8,128], index: 2, kind: input, shape index: {}]   ;;  %s4253_s3 = inlined_call_operand.vmem [shape: f32[128,128], index: 3, kind: input, shape index: {}]   ;;  %s4254_s4 = inlined_call_operand.vmem [shape: f32[256,128], index: 4, kind: input, shape index: {}]   ;;  %s4255_s5 = inlined_call_operand.hbm [shape: f32[8,128], index: 5, kind: output, shape index: {0}]   ;;  %s4256_s6 = inlined_call_operand.hbm [shape: f32[8,128], index: 6, kind: output, shape index: {1}]   ;;  %s4257_s7 = inlined_call_operand.hbm [shape: f32[8,128], index: 7, kind: output, shape index: {2}]  }
   0x1   :  { %14 = vsyncpa [#allocation4], 0 }
   0x2   :  { %15 = vsyncpa [#allocation7], 0  ;;  %s2924_s24 = smov [#allocation2]   ;;  %s2830_s28 = scalar_lea.hbm %s4251_s1, 16384 }
   0x3   :  { %s23_s25 = sshll.u32 %s2924_s24, 4  ;;  %p2831_p0 = scmp.ne.s32.totalorder %s4251_s1, %s2830_s28  ;;  %s24_s25 = int_to_ptr.vmem [resolvable:$true] %s23_s25 }
   0x4   :  { %p2834_p1 = scmp.lt.u32.totalorder %s2830_s28, %s4251_s1 }
   0x6   :  { %p2836_p2 = pnand %p2834_p1, %p2831_p0 }
   0x8   :  { %2839 = shalt.err (!%p2836_p2)
}
   0x9   :  { %s2840_s10 = scalar_lea.vmem %s24_s25, 16384  ;;  %p2845_p4 = scmp.lt.s32.totalorder %s24_s25, %s24_s25 }
   0xa   :  { %p2841_p3 = scmp.ne.s32.totalorder %s24_s25, %s2840_s10  ;;  %p2846_p5 = scmp.lt.s32.totalorder %s2840_s10, %s2840_s10 }
   0xc   :  { %p2847_p6 = por %p2846_p5, %p2845_p4 }
   0xe   :  { %p2848_p7 = pnand %p2847_p6, %p2841_p3 }
  0x10   :  { %2851 = shalt.err (!%p2848_p7)
}
  0x11   :  { %s2925_s11 = smov 128   ;;  %s2926_s12 = smov 8  }
  0x12   :  { %29 = dma.hbm_to_vmem [thread:$0]  %s4251_s1, 16384, %s24_s25, [#allocation3], %s2925_s11, %s2925_s11, %s2926_s12  }
  0x13   :  { %2918 = dma.done.wait [#allocation3], 16384  }
  0x14   :  { %2919 = vsyncadd [#allocation3], 4294950912  ;;  %v2927_v0 = vmov 0.0|0.0   ;;  %vm2928_vm0 = vmmov 0   ;;  %v2929_v1 = vmov 0.0   ;;  %v168_v2 = vld [vmem:[%s4253_s3] sm:$0xff]  ;;  %v259_v29 = vlaneseq }
  0x15   :  { %2630 = vmatprep.subr.bf16.mxu0 %v2927_v0  ;;  %2627 = vmatprep.mubr.msk.f32.mxu0 %vm2928_vm0, %v2929_v1  ;;  %v169_v3 = vld [vmem:[%s4253_s3 + $0x8] sm:$0xff]  ;;  %v170_v4 = vld [vmem:[%s4253_s3 + $0x10] sm:$0xff]  ;;  %v171_v6 = vld [vmem:[%s4253_s3 + $0x18] sm:$0xff]  ;;  %v2930_v27 = vmov 1966171168   ;;  %vm869_vm1 = vcmask 130112  }
  0x16   :  { %v2631_v5 = vpack.c.bf16 %v169_v3, %v168_v2  ;;  %v2634_v7 = vpack.c.bf16 %v171_v6, %v170_v4  ;;  %v172_v8 = vld [vmem:[%s4253_s3 + $0x20] sm:$0xff]  ;;  %v173_v9 = vld [vmem:[%s4253_s3 + $0x28] sm:$0xff]  ;;  %v174_v12 = vld [vmem:[%s4253_s3 + $0x30] sm:$0xff]  ;;  %v257_v28 = vunpack.c.l.s4 %v2930_v27  ;;  %v3038_v31 = vshrl.u32 %v259_v29, 7 }
  0x17   :  { %v39_v10 = vld [vmem:[%s4250_s0] sm:$0xff]  ;;  %v2637_v11 = vpack.c.bf16 %v173_v9, %v172_v8  ;;  %v175_v13 = vld [vmem:[%s4253_s3 + $0x38] sm:$0xff]  ;;  %v177_v16 = vld [vmem:[%s4253_s3 + $0x48] sm:$0xff]  ;;  %vm876_vm2 = vcmask 195712   ;;  %vm883_vm3 = vcmask 261312   ;;  %vm890_vm4 = vcmask 326912  }
  0x18   :  { %2632 = vmatpush3.bf16.msra.mxu0 %v2631_v5  ;;  %2491 = vmatprep.mubr.f32.mxu1 %v39_v10  ;;  %v2640_v14 = vpack.c.bf16 %v175_v13, %v174_v12  ;;  %v176_v15 = vld [vmem:[%s4253_s3 + $0x40] sm:$0xff]  ;;  %v178_v18 = vld [vmem:[%s4253_s3 + $0x50] sm:$0xff]  ;;  %v179_v19 = vld [vmem:[%s4253_s3 + $0x58] sm:$0xff]  ;;  %v258_v30 = vunpack.c.0.s8 %v257_v28  ;;  %4264 = vst [vmem:[#allocation12_spill] sm:$0xff] %v3038_v31  ;;  %v3042_v37 = vsub.s32 0, %v3038_v31  ;;  %vm897_vm5 = vcmask 392512  }
  0x19   :  { %2633 = vmatprep.subr.bf16.mxu0 %v2927_v0  ;;  %v2643_v17 = vpack.c.bf16 %v177_v16, %v176_v15  ;;  %v2646_v20 = vpack.c.bf16 %v179_v19, %v178_v18  ;;  %v180_v21 = vld [vmem:[%s4253_s3 + $0x60] sm:$0xff]  ;;  %v181_v22 = vld [vmem:[%s4253_s3 + $0x68] sm:$0xff]  ;;  %v182_v24 = vld [vmem:[%s4253_s3 + $0x70] sm:$0xff]  ;;  %vm904_vm6 = vcmask 458112   ;;  %vm911_vm7 = vcmask 523712  }
  0x1a   :  { %v2649_v23 = vpack.c.bf16 %v181_v22, %v180_v21  ;;  %v183_v25 = vld [vmem:[%s4253_s3 + $0x78] sm:$0xff]  ;;  %v261_v32 = vsub.s32 %v258_v30, %v3038_v31  ;;  %4265 = vst [vmem:[#allocation13_spill] sm:$0xff] %v3042_v37  ;;  %v44_v41 = vld [vmem:[#allocation2 + $0x20] sm:$0xff]  ;;  %v45_v47 = vld [vmem:[#allocation2 + $0x28] sm:$0xff]  ;;  %vm918_vm8 = vcmask 589312   ;;  %vm925_vm9 = vcmask 654912  }
  0x1b   :  { %v2652_v26 = vpack.c.bf16 %v183_v25, %v182_v24  ;;  %v40_v42 = vld [vmem:[#allocation2] sm:$0xff]  ;;  %v41_v48 = vld [vmem:[#allocation2 + $0x8] sm:$0xff]  ;;  %v42_v52 = vld [vmem:[#allocation2 + $0x10] sm:$0xff]  ;;  %vm932_vm10 = vcmask 720512   ;;  %vm939_vm11 = vcmask 786112   ;;  %vm4263_vm12 = vcmask 851712  }
  0x1c   :  { %2635 = vmatpush3.bf16.msra.mxu0 %v2634_v7  ;;  %v48_v51 = vld [vmem:[#allocation2 + $0x40] sm:$0xff]  ;;  %v49_v55 = vld [vmem:[#allocation2 + $0x48] sm:$0xff]  ;;  %v43_v56 = vld [vmem:[#allocation2 + $0x18] sm:$0xff]  ;;  %vm953_vm13 = vcmask 917312   ;;  %vm960_vm14 = vcmask 982912   ;;  %vm967_vm15 = vcmask 1048512  }
  0x1d   :  { %2636 = vmatprep.subr.bf16.mxu0 %v2927_v0  ;;  %v50_v59 = vld [vmem:[#allocation2 + $0x50] sm:$0xff]  ;;  %v47_v1 = vld [vmem:[#allocation2 + $0x38] sm:$0xff]  ;;  %v52_v6 = vld [vmem:[#allocation2 + $0x60] sm:$0xff]  ;;  %vm4258_vm0 = vcmask 1041409  }
  0x1e   :  { %v46_v60 = vld [vmem:[#allocation2 + $0x30] sm:$0xff]  ;;  %v72_v7 = vld [vmem:[#allocation2 + $0x100] sm:$0xff]  ;;  %v55_v22 = vld [vmem:[#allocation2 + $0x78] sm:$0xff] }
  0x1f   :  { %v74_v12 = vld [vmem:[#allocation2 + $0x110] sm:$0xff]  ;;  %v60_v18 = vld [vmem:[#allocation2 + $0xa0] sm:$0xff]  ;;  %v61_v27 = vld [vmem:[#allocation2 + $0xa8] sm:$0xff] }
  0x20   :  { %2638 = vmatpush3.bf16.msra.mxu0 %v2637_v11  ;;  %v53_v11 = vld [vmem:[#allocation2 + $0x68] sm:$0xff] }
  0x21   :  { %2639 = vmatprep.subr.bf16.mxu0 %v2927_v0 }
  0x24   :  { %2641 = vmatpush3.bf16.msra.mxu0 %v2640_v14 }
  0x25   :  { %2642 = vmatprep.subr.bf16.mxu0 %v2927_v0 }
  0x28   :  { %2644 = vmatpush3.bf16.msra.mxu0 %v2643_v17  ;;  %v54_v17 = vld [vmem:[#allocation2 + $0x70] sm:$0xff] }
  0x29   :  { %2645 = vmatprep.subr.bf16.mxu0 %v2927_v0 }
  0x2c   :  { %2647 = vmatpush3.bf16.msra.mxu0 %v2646_v20 }
  0x2d   :  { %2648 = vmatprep.subr.bf16.mxu0 %v2927_v0 }
  0x30   :  { %2650 = vmatpush3.bf16.msra.mxu0 %v2649_v23  ;;  %v105_v23 = vld [vmem:[#allocation2 + $0x208] sm:$0xff] }
  0x31   :  { %2651 = vmatprep.subr.bf16.mxu0 %v2927_v0  ;;  %v51_v0 = vld [vmem:[#allocation2 + $0x58] sm:$0xff] }
  0x34   :  { %2653 = vmatpush3.bf16.msra.mxu0 %v2652_v26  ;;  %v56_v26 = vld [vmem:[#allocation2 + $0x80] sm:$0xff] }
  0x37   :  { %2628 = vmatmul.mubr.f32.vlgmr.msra.gmra.mrb[0].mxu0 %v39_v10 }
 0x10a   :  { %v250_v33 = vpop.f32.mrb[0].mxu0 }
 0x10b   :  { %v255_v34 = vcombine.high %v250_v33, %v250_v33  ;;  %v262_v35 = vrot.slane %v250_v33, %v261_v32  ;;  %v2629_v36 = vpop.f32.mrb[1].mxu0  ;;  %v77_v33 = vld [vmem:[#allocation2 + $0x128] sm:$0xff] }
 0x10c   :  { %v58_v36 = vld [vmem:[#allocation2 + $0x90] sm:$0xff] }
 0x10d   :  { %v269_v38 = vrot.slane %v255_v34, %v261_v32  ;;  %v278_v39 = vrot.slane %v262_v35, %v261_v32  ;;  %v270_v2 = vcombine.high %v262_v35, %v262_v35 }
 0x10f   :  { %v271_v40 = vcombine.high %v269_v38, %v269_v38  ;;  %v3045_v43 = vrot.slane %v278_v39, %v3042_v37  ;;  %v300_v61 = vcombine.high %v278_v39, %v278_v39  ;;  %v3064_v8 = vrot.slane %v270_v2, %v261_v32  ;;  %v68_v2 = vld [vmem:[#allocation2 + $0xe0] sm:$0xff] }
 0x110   :  { %v3068_v13 = vrot.slane %v269_v38, %v261_v32  ;;  %v107_v38 = vld [vmem:[#allocation2 + $0x218] sm:$0xff] }
 0x111   :  { %v3047_v44 = vrot.slane %v271_v40, %v261_v32  ;;  %v348_v45 = vmul.f32 %v3045_v43, %v44_v41  ;;  %v344_v46 = vmul.f32 %v3045_v43, %v40_v42  ;;  %v349_v49 = vmul.f32 %v3045_v43, %v45_v47  ;;  %v57_v32 = vld [vmem:[#allocation2 + $0x88] sm:$0xff]  ;;  %v78_v42 = vld [vmem:[#allocation2 + $0x130] sm:$0xff]  ;;  %v108_v47 = vld [vmem:[#allocation2 + $0x220] sm:$0xff] }
 0x112   :  { %v345_v50 = vmul.f32 %v3045_v43, %v41_v48  ;;  %v352_v53 = vmul.f32 %v3045_v43, %v48_v51  ;;  %v346_v54 = vmul.f32 %v3045_v43, %v42_v52  ;;  %v353_v57 = vmul.f32 %v3045_v43, %v49_v55  ;;  %v73_v41 = vld [vmem:[#allocation2 + $0x108] sm:$0xff]  ;;  %v64_v51 = vld [vmem:[#allocation2 + $0xc0] sm:$0xff] }
 0x113   :  { %480 = vadd.xlane.f32.xlu1 %v348_v45  ;;  %472 = vadd.xlane.f32.xlu0 %v344_v46  ;;  %v347_v58 = vmul.f32 %v3045_v43, %v43_v56  ;;  %v354_v62 = vmul.f32 %v3045_v43, %v50_v59  ;;  %v350_v63 = vmul.f32 %v3045_v43, %v46_v60  ;;  %v59_v46 = vld [vmem:[#allocation2 + $0x98] sm:$0xff]  ;;  %v104_v55 = vld [vmem:[#allocation2 + $0x200] sm:$0xff] }
 0x114   :  { %v3060_v3 = vrot.slane %v300_v61, %v3042_v37  ;;  %v355_v4 = vmul.f32 %v3045_v43, %v51_v0  ;;  %v351_v5 = vmul.f32 %v3045_v43, %v47_v1  ;;  %v356_v9 = vmul.f32 %v3045_v43, %v52_v6  ;;  %v76_v59 = vld [vmem:[#allocation2 + $0x120] sm:$0xff] }
 0x115   :  { %v3072_v14 = vrot.slane %v3064_v8, %v3042_v37  ;;  %v357_v15 = vmul.f32 %v3045_v43, %v53_v11  ;;  %v3078_v19 = vrot.slane %v3068_v13, %v3042_v37  ;;  %v358_v20 = vmul.f32 %v3045_v43, %v54_v17 }
 0x116   :  { %v376_v10 = vmul.f32 %v3060_v3, %v72_v7  ;;  %v378_v16 = vmul.f32 %v3060_v3, %v74_v12  ;;  %v359_v24 = vmul.f32 %v3045_v43, %v55_v22  ;;  %v381_v35 = vmul.f32 %v3060_v3, %v77_v33  ;;  %v69_v7 = vld [vmem:[#allocation2 + $0xe8] sm:$0xff]  ;;  %v70_v12 = vld [vmem:[#allocation2 + $0xf0] sm:$0xff] }
 0x117   :  { %482 = vadd.xlane.f32.xlu1 %v349_v49  ;;  %474 = vadd.xlane.f32.xlu0 %v345_v50  ;;  %v364_v21 = vmul.f32 %v3072_v14, %v60_v18  ;;  %v409_v25 = vmul.f32 %v3078_v19, %v105_v23  ;;  %v360_v28 = vmul.f32 %v3072_v14, %v56_v26  ;;  %v75_v50 = vld [vmem:[#allocation2 + $0x118] sm:$0xff]  ;;  %v118_v23 = vld [vmem:[#allocation2 + $0x270] sm:$0xff] }
 0x118   :  { %v365_v30 = vmul.f32 %v3072_v14, %v61_v27  ;;  %v361_v34 = vmul.f32 %v3072_v14, %v57_v32  ;;  %v362_v39 = vmul.f32 %v3072_v14, %v58_v36  ;;  %v411_v40 = vmul.f32 %v3078_v19, %v107_v38  ;;  %v71_v18 = vld [vmem:[#allocation2 + $0xf8] sm:$0xff]  ;;  %v90_v38 = vld [vmem:[#allocation2 + $0x190] sm:$0xff] }
 0x119   :  { %v377_v43 = vmul.f32 %v3060_v3, %v73_v41  ;;  %v382_v45 = vmul.f32 %v3060_v3, %v78_v42  ;;  %v363_v48 = vmul.f32 %v3072_v14, %v59_v46  ;;  %v412_v49 = vmul.f32 %v3078_v19, %v108_v47  ;;  %v91_v42 = vld [vmem:[#allocation2 + $0x198] sm:$0xff] }
 0x11a   :  { %v379_v52 = vmul.f32 %v3060_v3, %v75_v50  ;;  %v380_v61 = vmul.f32 %v3060_v3, %v76_v59  ;;  %v422_v26 = vmul.f32 %v3078_v19, %v118_v23  ;;  %v3127_v46 = vrot.slane %v3047_v44, %v3042_v37  ;;  %v120_v50 = vld [vmem:[#allocation2 + $0x280] sm:$0xff] }
 0x11b   :  { %488 = vadd.xlane.f32.xlu1 %v352_v53  ;;  %476 = vadd.xlane.f32.xlu0 %v346_v54  ;;  %v368_v53 = vmul.f32 %v3072_v14, %v64_v51  ;;  %v65_v54 = vld [vmem:[#allocation2 + $0xc8] sm:$0xff] }
 0x11c   :  { %v369_v56 = vmul.f32 %v3072_v14, %v65_v54  ;;  %v136_v54 = vld [vmem:[#allocation2 + $0x300] sm:$0xff] }
 0x11f   :  { %490 = vadd.xlane.f32.xlu1 %v353_v57  ;;  %478 = vadd.xlane.f32.xlu0 %v347_v58  ;;  %v408_v57 = vmul.f32 %v3078_v19, %v104_v55  ;;  %v66_v58 = vld [vmem:[#allocation2 + $0xd0] sm:$0xff] }
 0x120   :  { %v370_v60 = vmul.f32 %v3072_v14, %v66_v58  ;;  %v138_v58 = vld [vmem:[#allocation2 + $0x310] sm:$0xff] }
 0x123   :  { %492 = vadd.xlane.f32.xlu1 %v354_v62  ;;  %484 = vadd.xlane.f32.xlu0 %v350_v63  ;;  %v67_v62 = vld [vmem:[#allocation2 + $0xd8] sm:$0xff]  ;;  %v106_v63 = vld [vmem:[#allocation2 + $0x210] sm:$0xff] }
 0x124   :  { %v371_v0 = vmul.f32 %v3072_v14, %v67_v62  ;;  %v410_v1 = vmul.f32 %v3078_v19, %v106_v63  ;;  %v94_v62 = vld [vmem:[#allocation2 + $0x1b0] sm:$0xff] }
 0x127   :  { %494 = vadd.xlane.f32.xlu1 %v355_v4  ;;  %486 = vadd.xlane.f32.xlu0 %v351_v5  ;;  %v62_v4 = vld [vmem:[#allocation2 + $0xb0] sm:$0xff]  ;;  %v372_v5 = vmul.f32 %v3072_v14, %v68_v2  ;;  %v124_v2 = vld [vmem:[#allocation2 + $0x2a0] sm:$0xff] }
 0x128   :  { %v366_v6 = vmul.f32 %v3072_v14, %v62_v4 }
 0x12b   :  { %496 = vadd.xlane.f32.xlu1 %v356_v9  ;;  %536 = vadd.xlane.f32.xlu0 %v376_v10  ;;  %v63_v9 = vld [vmem:[#allocation2 + $0xb8] sm:$0xff]  ;;  %v373_v10 = vmul.f32 %v3072_v14, %v69_v7 }
 0x12c   :  { %v367_v11 = vmul.f32 %v3072_v14, %v63_v9  ;;  %v95_v7 = vld [vmem:[#allocation2 + $0x1b8] sm:$0xff] }
 0x12f   :  { %498 = vadd.xlane.f32.xlu1 %v357_v15  ;;  %540 = vadd.xlane.f32.xlu0 %v378_v16  ;;  %v79_v15 = vld [vmem:[#allocation2 + $0x138] sm:$0xff]  ;;  %v374_v16 = vmul.f32 %v3072_v14, %v70_v12  ;;  %v125_v12 = vld [vmem:[#allocation2 + $0x2a8] sm:$0xff] }
 0x130   :  { %v383_v17 = vmul.f32 %v3060_v3, %v79_v15 }
 0x133   :  { %500 = vadd.xlane.f32.xlu1 %v358_v20  ;;  %512 = vadd.xlane.f32.xlu0 %v364_v21  ;;  %v109_v20 = vld [vmem:[#allocation2 + $0x228] sm:$0xff]  ;;  %v375_v21 = vmul.f32 %v3072_v14, %v71_v18  ;;  %v96_v18 = vld [vmem:[#allocation2 + $0x1c0] sm:$0xff] }
 0x134   :  { %v413_v22 = vmul.f32 %v3078_v19, %v109_v20  ;;  %v3149_v20 = vand.u32 127, %v259_v29 }
 0x136   :  { %v864_v23 = vadd.s32 4294967288, %v3149_v20 }
 0x137   :  { %502 = vadd.xlane.f32.xlu1 %v359_v24  ;;  %602 = vadd.xlane.f32.xlu0 %v409_v25  ;;  %v80_v24 = vld [vmem:[#allocation2 + $0x140] sm:$0xff]  ;;  %v302_v25 = vcombine.high %v3064_v8, %v3064_v8 }
 0x138   :  { %v384_v27 = vmul.f32 %v3060_v3, %v80_v24  ;;  %v116_v24 = vld [vmem:[#allocation2 + $0x260] sm:$0xff] }
 0x139   :  { %v3115_v32 = vrot.slane %v302_v25, %v3042_v37  ;;  %v126_v25 = vld [vmem:[#allocation2 + $0x2b0] sm:$0xff]  ;;  %v420_v29 = vmul.f32 %v3078_v19, %v116_v24  ;;  %v92_v24 = vld [vmem:[#allocation2 + $0x1a0] sm:$0xff] }
 0x13b   :  { %504 = vadd.xlane.f32.xlu1 %v360_v28  ;;  %514 = vadd.xlane.f32.xlu0 %v365_v30  ;;  %v119_v28 = vld [vmem:[#allocation2 + $0x278] sm:$0xff]  ;;  %v110_v30 = vld [vmem:[#allocation2 + $0x230] sm:$0xff]  ;;  %v395_v47 = vmul.f32 %v3115_v32, %v91_v42 }
 0x13c   :  { %v423_v14 = vmul.f32 %v3078_v19, %v119_v28  ;;  %v414_v33 = vmul.f32 %v3078_v19, %v110_v30  ;;  %v430_v30 = vmul.f32 %v3127_v46, %v126_v25 }
 0x13f   :  { %506 = vadd.xlane.f32.xlu1 %v361_v34  ;;  %546 = vadd.xlane.f32.xlu0 %v381_v35  ;;  %v89_v34 = vld [vmem:[#allocation2 + $0x188] sm:$0xff] }
 0x140   :  { %v81_v35 = vld [vmem:[#allocation2 + $0x148] sm:$0xff]  ;;  %v393_v8 = vmul.f32 %v3115_v32, %v89_v34 }
 0x141   :  { %v385_v36 = vmul.f32 %v3060_v3, %v81_v35  ;;  %v97_v34 = vld [vmem:[#allocation2 + $0x1c8] sm:$0xff]  ;;  %v871_v35 = vadd.s32 4294967280, %v3149_v20 }
 0x143   :  { %508 = vadd.xlane.f32.xlu1 %v362_v39  ;;  %606 = vadd.xlane.f32.xlu0 %v411_v40  ;;  %v111_v39 = vld [vmem:[#allocation2 + $0x238] sm:$0xff]  ;;  %v394_v40 = vmul.f32 %v3115_v32, %v90_v38  ;;  %v3171_v42 = vsub.s32 %v871_v35, %v3038_v31 }
 0x144   :  { %v415_v41 = vmul.f32 %v3078_v19, %v111_v39  ;;  %v401_v39 = vmul.f32 %v3115_v32, %v97_v34 }
 0x147   :  { %538 = vadd.xlane.f32.xlu1 %v377_v43  ;;  %548 = vadd.xlane.f32.xlu0 %v382_v45  ;;  %v82_v43 = vld [vmem:[#allocation2 + $0x150] sm:$0xff]  ;;  %v301_v45 = vcombine.high %v3068_v13, %v3068_v13  ;;  %v83_v13 = vld [vmem:[#allocation2 + $0x158] sm:$0xff] }
 0x148   :  { %v387_v55 = vmul.f32 %v3060_v3, %v83_v13 }
 0x149   :  { %v3132_v51 = vrot.slane %v301_v45, %v3042_v37  ;;  %v878_v45 = vadd.s32 4294967272, %v3149_v20 }
 0x14b   :  { %510 = vadd.xlane.f32.xlu1 %v363_v48  ;;  %608 = vadd.xlane.f32.xlu0 %v412_v49  ;;  %v386_v48 = vmul.f32 %v3060_v3, %v82_v43  ;;  %v112_v49 = vld [vmem:[#allocation2 + $0x240] sm:$0xff]  ;;  %v117_v43 = vld [vmem:[#allocation2 + $0x268] sm:$0xff] }
 0x14f   :  { %542 = vadd.xlane.f32.xlu1 %v379_v52  ;;  %520 = vadd.xlane.f32.xlu0 %v368_v53  ;;  %v416_v52 = vmul.f32 %v3078_v19, %v112_v49  ;;  %v424_v53 = vmul.f32 %v3127_v46, %v120_v50  ;;  %v892_v49 = vadd.s32 4294967256, %v3149_v20 }
 0x153   :  { %522 = vadd.xlane.f32.xlu0 %v369_v56  ;;  %600 = vadd.xlane.f32.xlu1 %v408_v57  ;;  %v440_v56 = vmul.f32 %v3132_v51, %v136_v54  ;;  %v113_v57 = vld [vmem:[#allocation2 + $0x248] sm:$0xff] }
 0x154   :  { %v417_v59 = vmul.f32 %v3078_v19, %v113_v57  ;;  %v98_v57 = vld [vmem:[#allocation2 + $0x1d0] sm:$0xff] }
 0x157   :  { %524 = vadd.xlane.f32.xlu0 %v370_v60  ;;  %544 = vadd.xlane.f32.xlu1 %v380_v61  ;;  %v442_v60 = vmul.f32 %v3132_v51, %v138_v58  ;;  %v84_v61 = vld [vmem:[#allocation2 + $0x160] sm:$0xff]  ;;  %v899_v58 = vadd.s32 4294967248, %v3149_v20 }
 0x158   :  { %v388_v63 = vmul.f32 %v3060_v3, %v84_v61 }
 0x15b   :  { %526 = vadd.xlane.f32.xlu0 %v371_v0  ;;  %604 = vadd.xlane.f32.xlu1 %v410_v1  ;;  %v398_v0 = vmul.f32 %v3115_v32, %v94_v62  ;;  %v114_v1 = vld [vmem:[#allocation2 + $0x250] sm:$0xff] }
 0x15c   :  { %v418_v4 = vmul.f32 %v3078_v19, %v114_v1  ;;  %v402_v1 = vmul.f32 %v3115_v32, %v98_v57 }
 0x15f   :  { %528 = vadd.xlane.f32.xlu0 %v372_v5  ;;  %516 = vadd.xlane.f32.xlu1 %v366_v6  ;;  %v428_v5 = vmul.f32 %v3127_v46, %v124_v2  ;;  %v85_v6 = vld [vmem:[#allocation2 + $0x168] sm:$0xff]  ;;  %v128_v2 = vld [vmem:[#allocation2 + $0x2c0] sm:$0xff] }
 0x160   :  { %v389_v9 = vmul.f32 %v3060_v3, %v85_v6  ;;  %v906_v6 = vadd.s32 4294967240, %v3149_v20 }
 0x163   :  { %530 = vadd.xlane.f32.xlu0 %v373_v10  ;;  %518 = vadd.xlane.f32.xlu1 %v367_v11  ;;  %v399_v10 = vmul.f32 %v3115_v32, %v95_v7  ;;  %v115_v11 = vld [vmem:[#allocation2 + $0x258] sm:$0xff] }
 0x164   :  { %v419_v15 = vmul.f32 %v3078_v19, %v115_v11 }
 0x167   :  { %532 = vadd.xlane.f32.xlu0 %v374_v16  ;;  %550 = vadd.xlane.f32.xlu1 %v383_v17  ;;  %v429_v16 = vmul.f32 %v3127_v46, %v125_v12  ;;  %v86_v17 = vld [vmem:[#allocation2 + $0x170] sm:$0xff]  ;;  %v920_v12 = vadd.s32 4294967224, %v3149_v20 }
 0x169   :  { %v3223_v34 = vsub.s32 %v920_v12, %v3038_v31 }
 0x16b   :  { %534 = vadd.xlane.f32.xlu0 %v375_v21  ;;  %610 = vadd.xlane.f32.xlu1 %v413_v22  ;;  %v390_v21 = vmul.f32 %v3060_v3, %v86_v17  ;;  %v400_v22 = vmul.f32 %v3115_v32, %v96_v18  ;;  %v927_v18 = vadd.s32 4294967216, %v3149_v20 }
 0x16f   :  { %628 = vadd.xlane.f32.xlu0 %v422_v26  ;;  %552 = vadd.xlane.f32.xlu1 %v384_v27  ;;  %v3158_v27 = vsub.s32 %v3149_v20, %v3038_v31 }
 0x173   :  { %630 = vadd.xlane.f32.xlu0 %v423_v14  ;;  %612 = vadd.xlane.f32.xlu1 %v414_v33  ;;  %v3163_v14 = vsub.s32 %v864_v23, %v3038_v31  ;;  %v87_v33 = vld [vmem:[#allocation2 + $0x178] sm:$0xff]  ;;  %v934_v23 = vadd.s32 4294967208, %v3149_v20 }
 0x174   :  { %v391_v38 = vmul.f32 %v3060_v3, %v87_v33 }
 0x177   :  { %570 = vadd.xlane.f32.xlu0 %v393_v8  ;;  %554 = vadd.xlane.f32.xlu1 %v385_v36 }
 0x17b   :  { %572 = vadd.xlane.f32.xlu0 %v394_v40  ;;  %614 = vadd.xlane.f32.xlu1 %v415_v41 }
 0x17f   :  { %574 = vadd.xlane.f32.xlu0 %v395_v47  ;;  %556 = vadd.xlane.f32.xlu1 %v386_v48  ;;  %v885_v47 = vadd.s32 4294967264, %v3149_v20  ;;  %v127_v48 = vld [vmem:[#allocation2 + $0x2b8] sm:$0xff] }
 0x180   :  { %v431_v54 = vmul.f32 %v3127_v46, %v127_v48 }
 0x183   :  { %616 = vadd.xlane.f32.xlu1 %v416_v52  ;;  %632 = vadd.xlane.f32.xlu0 %v424_v53  ;;  %v421_v53 = vmul.f32 %v3078_v19, %v117_v43  ;;  %v121_v19 = vld [vmem:[#allocation2 + $0x288] sm:$0xff] }
 0x187   :  { %558 = vadd.xlane.f32.xlu1 %v387_v55  ;;  %664 = vadd.xlane.f32.xlu0 %v440_v56  ;;  %v3183_v55 = vsub.s32 %v878_v45, %v3038_v31  ;;  %v88_v56 = vld [vmem:[#allocation2 + $0x180] sm:$0xff]  ;;  %v948_v45 = vadd.s32 4294967192, %v3149_v20 }
 0x18b   :  { %618 = vadd.xlane.f32.xlu1 %v417_v59  ;;  %668 = vadd.xlane.f32.xlu0 %v442_v60  ;;  %v3187_v59 = vsub.s32 %v885_v47, %v3038_v31  ;;  %v3190_v60 = vsub.s32 %v892_v49, %v3038_v31  ;;  %v3233_v47 = vsub.s32 %v934_v23, %v3038_v31 }
 0x18f   :  { %560 = vadd.xlane.f32.xlu1 %v388_v63  ;;  %580 = vadd.xlane.f32.xlu0 %v398_v0  ;;  %v392_v0 = vmul.f32 %v3115_v32, %v88_v56 }
 0x193   :  { %620 = vadd.xlane.f32.xlu1 %v418_v4  ;;  %640 = vadd.xlane.f32.xlu0 %v428_v5  ;;  %v3199_v5 = vsub.s32 %v899_v58, %v3038_v31 }
 0x197   :  { %562 = vadd.xlane.f32.xlu1 %v389_v9  ;;  %582 = vadd.xlane.f32.xlu0 %v399_v10  ;;  %v913_v9 = vadd.s32 4294967232, %v3149_v20  ;;  %v425_v10 = vmul.f32 %v3127_v46, %v121_v19 }
 0x199   :  { %v3220_v33 = vsub.s32 %v913_v9, %v3038_v31 }
 0x19b   :  { %622 = vadd.xlane.f32.xlu1 %v419_v15  ;;  %642 = vadd.xlane.f32.xlu0 %v429_v16  ;;  %v432_v16 = vmul.f32 %v3127_v46, %v128_v2 }
 0x19f   :  { %564 = vadd.xlane.f32.xlu1 %v390_v21  ;;  %584 = vadd.xlane.f32.xlu0 %v400_v22 }
 0x1a0   :  { %v3154_v26 = vpop.xlane.xlu1 %480  ;;  %v473_v28 = vpop.xlane.xlu0 %472 }
 0x1a1   :  { %v863_v40 = vrot.slane %v473_v28, %v3158_v27  ;;  %v889_v7 = vrot.slane %v3154_v26, %v3187_v59  ;;  %v3216_v28 = vsub.s32 %v906_v6, %v3038_v31 }
 0x1a3   :  { %624 = vadd.xlane.f32.xlu1 %v420_v29  ;;  %644 = vadd.xlane.f32.xlu0 %v430_v30  ;;  %v99_v29 = vld [vmem:[#allocation2 + $0x1d8] sm:$0xff]  ;;  %v941_v30 = vadd.s32 4294967200, %v3149_v20 }
 0x1a4   :  { %v483_v8 = vpop.xlane.xlu1 %482  ;;  %v475_v36 = vpop.xlane.xlu0 %474  ;;  %v403_v43 = vmul.f32 %v3115_v32, %v99_v29 }
 0x1a5   :  { %v868_v41 = vrot.slane %v475_v36, %v3163_v14  ;;  %v896_v11 = vrot.slane %v483_v8, %v3190_v60  ;;  %v396_v8 = vmul.f32 %v3115_v32, %v92_v24  ;;  %v122_v36 = vld [vmem:[#allocation2 + $0x290] sm:$0xff]  ;;  %v3237_v49 = vsub.s32 %v941_v30, %v3038_v31 }
 0x1a7   :  { %v870_v50 = vsel %vm869_vm1, %v868_v41, %v863_v40  ;;  %566 = vadd.xlane.f32.xlu1 %v391_v38  ;;  %586 = vadd.xlane.f32.xlu0 %v401_v39  ;;  %v129_v38 = vld [vmem:[#allocation2 + $0x2c8] sm:$0xff]  ;;  %v3228_v39 = vsub.s32 %v927_v18, %v3038_v31 }
 0x1a8   :  { %v3177_v3 = vpop.xlane.xlu1 %488  ;;  %v477_v52 = vpop.xlane.xlu0 %476  ;;  %v93_v18 = vld [vmem:[#allocation2 + $0x1a8] sm:$0xff] }
 0x1a9   :  { %v875_v13 = vrot.slane %v477_v52, %v3171_v42  ;;  %v426_v52 = vmul.f32 %v3127_v46, %v122_v36 }
 0x1ab   :  { %v877_v61 = vsel %vm876_vm2, %v875_v13, %v870_v50  ;;  %626 = vadd.xlane.f32.xlu1 %v421_v53  ;;  %646 = vadd.xlane.f32.xlu0 %v431_v54  ;;  %v917_v50 = vrot.slane %v3177_v3, %v3220_v33  ;;  %v433_v53 = vmul.f32 %v3127_v46, %v129_v38 }
 0x1ac   :  { %v3193_v62 = vpop.xlane.xlu1 %490  ;;  %v479_v63 = vpop.xlane.xlu0 %478 }
 0x1ad   :  { %v882_v4 = vrot.slane %v479_v63, %v3183_v55  ;;  %v924_v13 = vrot.slane %v3193_v62, %v3223_v34 }
 0x1af   :  { %v884_v15 = vsel %vm883_vm3, %v882_v4, %v877_v61  ;;  %568 = vadd.xlane.f32.xlu1 %v392_v0  ;;  %588 = vadd.xlane.f32.xlu0 %v402_v1  ;;  %v3251_v61 = vsub.s32 %v948_v45, %v3038_v31  ;;  %v137_v0 = vld [vmem:[#allocation2 + $0x308] sm:$0xff]  ;;  %v955_v1 = vadd.s32 4294967184, %v3149_v20  ;;  %v100_v4 = vld [vmem:[#allocation2 + $0x1e0] sm:$0xff]  ;;  %v139_v45 = vld [vmem:[#allocation2 + $0x318] sm:$0xff] }
 0x1b0   :  { %v891_v17 = vsel %vm890_vm4, %v889_v7, %v884_v15  ;;  %v493_v21 = vpop.xlane.xlu1 %492  ;;  %v485_v22 = vpop.xlane.xlu0 %484  ;;  %v404_v15 = vmul.f32 %v3115_v32, %v100_v4  ;;  %v132_v4 = vld [vmem:[#allocation2 + $0x2e0] sm:$0xff] }
 0x1b1   :  { %v898_v25 = vsel %vm897_vm5, %v896_v11, %v891_v17  ;;  %v903_v26 = vrot.slane %v485_v22, %v3199_v5  ;;  %v931_v56 = vrot.slane %v493_v21, %v3228_v39  ;;  %v441_v11 = vmul.f32 %v3132_v51, %v137_v0  ;;  %v130_v21 = vld [vmem:[#allocation2 + $0x2d0] sm:$0xff] }
 0x1b2   :  { %v962_v17 = vadd.s32 4294967176, %v3149_v20  ;;  %v434_v29 = vmul.f32 %v3127_v46, %v130_v21  ;;  %v123_v20 = vld [vmem:[#allocation2 + $0x298] sm:$0xff] }
 0x1b3   :  { %v905_v35 = vsel %vm904_vm6, %v903_v26, %v898_v25  ;;  %634 = vadd.xlane.f32.xlu1 %v425_v10  ;;  %648 = vadd.xlane.f32.xlu0 %v432_v16  ;;  %v3266_v16 = vsub.s32 %v955_v1, %v3038_v31  ;;  %v397_v26 = vmul.f32 %v3115_v32, %v93_v18  ;;  %v148_v18 = vld [vmem:[#allocation2 + $0x360] sm:$0xff] }
 0x1b4   :  { %v495_v40 = vpop.xlane.xlu1 %494  ;;  %v487_v41 = vpop.xlane.xlu0 %486  ;;  %v3276_v30 = vsub.s32 %v962_v17, %v3038_v31  ;;  %v142_v17 = vld [vmem:[#allocation2 + $0x330] sm:$0xff] }
 0x1b5   :  { %v910_v48 = vrot.slane %v487_v41, %v3216_v28  ;;  %v938_v19 = vrot.slane %v495_v40, %v3233_v47  ;;  %v427_v41 = vmul.f32 %v3127_v46, %v123_v20  ;;  %v452_v20 = vmul.f32 %v3132_v51, %v148_v18  ;;  %v154_v18 = vld [vmem:[#allocation2 + $0x390] sm:$0xff] }
 0x1b7   :  { %v912_v54 = vsel %vm911_vm7, %v910_v48, %v905_v35  ;;  %576 = vadd.xlane.f32.xlu1 %v396_v8  ;;  %590 = vadd.xlane.f32.xlu0 %v403_v43  ;;  %v101_v35 = vld [vmem:[#allocation2 + $0x1e8] sm:$0xff]  ;;  %v131_v48 = vld [vmem:[#allocation2 + $0x2d8] sm:$0xff] }
 0x1b8   :  { %v919_v57 = vsel %vm918_vm8, %v917_v50, %v912_v54  ;;  %v497_v3 = vpop.xlane.xlu1 %496  ;;  %v3248_v58 = vpop.xlane.xlu0 %536  ;;  %v405_v43 = vmul.f32 %v3115_v32, %v101_v35  ;;  %v435_v54 = vmul.f32 %v3127_v46, %v131_v48 }
 0x1b9   :  { %v926_v62 = vsel %vm925_vm9, %v924_v13, %v919_v57  ;;  %v945_v63 = vrot.slane %v497_v3, %v3237_v49  ;;  %v443_v13 = vmul.f32 %v3132_v51, %v139_v45  ;;  %v102_v57 = vld [vmem:[#allocation2 + $0x1f0] sm:$0xff]  ;;  %v303_v45 = vcombine.high %v3047_v44, %v3047_v44 }
 0x1ba   :  { %v933_v2 = vsel %vm932_vm10, %v931_v56, %v926_v62  ;;  %v140_v56 = vld [vmem:[#allocation2 + $0x320] sm:$0xff]  ;;  %v406_v1 = vmul.f32 %v3115_v32, %v102_v57 }
 0x1bb   :  { %v940_v6 = vsel %vm939_vm11, %v938_v19, %v933_v2  ;;  %636 = vadd.xlane.f32.xlu1 %v426_v52  ;;  %650 = vadd.xlane.f32.xlu0 %v433_v53  ;;  %v444_v0 = vmul.f32 %v3132_v51, %v140_v56  ;;  %v141_v2 = vld [vmem:[#allocation2 + $0x328] sm:$0xff]  ;;  %v135_v56 = vld [vmem:[#allocation2 + $0x2f8] sm:$0xff] }
 0x1bc   :  { %v947_v7 = vsel %vm4263_vm12, %v945_v63, %v940_v6  ;;  %v499_v9 = vpop.xlane.xlu1 %498  ;;  %v3260_v10 = vpop.xlane.xlu0 %540 }
 0x1bd   :  { %v952_v12 = vrot.slane %v499_v9, %v3251_v61  ;;  %v1060_v35 = vrot.slane %v3260_v10, %v3171_v42 }
 0x1bf   :  { %v954_v22 = vsel %vm953_vm13, %v952_v12, %v947_v7  ;;  %666 = vadd.xlane.f32.xlu1 %v441_v11  ;;  %592 = vadd.xlane.f32.xlu0 %v404_v15  ;;  %v445_v12 = vmul.f32 %v3132_v51, %v141_v2  ;;  %v436_v15 = vmul.f32 %v3127_v46, %v132_v4  ;;  %v145_v4 = vld [vmem:[#allocation2 + $0x348] sm:$0xff] }
 0x1c0   :  { %v501_v23 = vpop.xlane.xlu1 %500  ;;  %v3270_v24 = vpop.xlane.xlu0 %512 }
 0x1c1   :  { %v959_v25 = vrot.slane %v501_v23, %v3266_v16 }
 0x1c3   :  { %v961_v8 = vsel %vm960_vm14, %v959_v25, %v954_v22  ;;  %578 = vadd.xlane.f32.xlu1 %v397_v26  ;;  %652 = vadd.xlane.f32.xlu0 %v434_v29  ;;  %v1051_v25 = vrot.slane %v3248_v58, %v3158_v27  ;;  %v446_v29 = vmul.f32 %v3132_v51, %v142_v17  ;;  %v146_v17 = vld [vmem:[#allocation2 + $0x350] sm:$0xff] }
 0x1c4   :  { %v503_v36 = vpop.xlane.xlu1 %502  ;;  %v3279_v38 = vpop.xlane.xlu0 %602 }
 0x1c5   :  { %v966_v40 = vrot.slane %v503_v36, %v3276_v30  ;;  %v149_v36 = vld [vmem:[#allocation2 + $0x368] sm:$0xff] }
 0x1c6   :  { %v453_v10 = vmul.f32 %v3132_v51, %v149_v36  ;;  %v147_v36 = vld [vmem:[#allocation2 + $0x358] sm:$0xff] }
 0x1c7   :  { %v3285_v50 = vsel %vm967_vm15, %v966_v40, %v961_v8  ;;  %638 = vadd.xlane.f32.xlu1 %v427_v41  ;;  %594 = vadd.xlane.f32.xlu0 %v405_v43  ;;  %v143_v8 = vld [vmem:[#allocation2 + $0x338] sm:$0xff] }
 0x1c8   :  { %v505_v52 = vpop.xlane.xlu1 %504  ;;  %v515_v53 = vpop.xlane.xlu0 %514 }
 0x1c9   :  { %v972_v62 = vrot.slane %v505_v52, %v3158_v27  ;;  %v447_v52 = vmul.f32 %v3132_v51, %v143_v8  ;;  %v996_v57 = vrot.slane %v515_v53, %v3190_v60  ;;  %v153_v53 = vld [vmem:[#allocation2 + $0x388] sm:$0xff] }
 0x1cb   :  { %670 = vadd.xlane.f32.xlu1 %v443_v13  ;;  %654 = vadd.xlane.f32.xlu0 %v435_v54  ;;  %v991_v13 = vrot.slane %v3270_v24, %v3187_v59  ;;  %v144_v54 = vld [vmem:[#allocation2 + $0x340] sm:$0xff]  ;;  %v439_v24 = vmul.f32 %v3127_v46, %v135_v56 }
 0x1cc   :  { %v507_v3 = vpop.xlane.xlu1 %506  ;;  %v3289_v19 = vpop.xlane.xlu0 %546 }
 0x1cd   :  { %v976_v63 = vrot.slane %v507_v3, %v3163_v14 }
 0x1cf   :  { %v977_v6 = vsel %vm869_vm1, %v976_v63, %v972_v62  ;;  %672 = vadd.xlane.f32.xlu1 %v444_v0  ;;  %596 = vadd.xlane.f32.xlu0 %v406_v1  ;;  %v3328_v0 = vrot.slane %v303_v45, %v3042_v37  ;;  %v448_v1 = vmul.f32 %v3132_v51, %v144_v54 }
 0x1d0   :  { %v509_v7 = vpop.xlane.xlu1 %508  ;;  %v3296_v9 = vpop.xlane.xlu0 %606 }
 0x1d1   :  { %v981_v11 = vrot.slane %v509_v7, %v3171_v42 }
 0x1d3   :  { %v982_v21 = vsel %vm876_vm2, %v981_v11, %v977_v6  ;;  %674 = vadd.xlane.f32.xlu1 %v445_v12  ;;  %656 = vadd.xlane.f32.xlu0 %v436_v15  ;;  %v449_v11 = vmul.f32 %v3132_v51, %v145_v4  ;;  %v457_v12 = vmul.f32 %v3328_v0, %v153_v53 }
 0x1d4   :  { %v539_v22 = vpop.xlane.xlu1 %538  ;;  %v3302_v23 = vpop.xlane.xlu0 %548 }
 0x1d5   :  { %v1055_v26 = vrot.slane %v539_v22, %v3163_v14 }
 0x1d7   :  { %v1056_v40 = vsel %vm869_vm1, %v1055_v26, %v1051_v25  ;;  %676 = vadd.xlane.f32.xlu1 %v446_v29  ;;  %688 = vadd.xlane.f32.xlu0 %v452_v20  ;;  %v450_v26 = vmul.f32 %v3132_v51, %v146_v17  ;;  %v458_v29 = vmul.f32 %v3328_v0, %v154_v18 }
 0x1d8   :  { %v511_v41 = vpop.xlane.xlu1 %510  ;;  %v3312_v43 = vpop.xlane.xlu0 %608  ;;  %v1061_v58 = vsel %vm876_vm2, %v1060_v35, %v1056_v40  ;;  %v1075_v20 = vrot.slane %v3289_v19, %v3190_v60  ;;  %v155_v40 = vld [vmem:[#allocation2 + $0x398] sm:$0xff] }
 0x1d9   :  { %v986_v48 = vrot.slane %v511_v41, %v3183_v55  ;;  %v1080_v41 = vrot.slane %v3302_v23, %v3199_v5  ;;  %v459_v54 = vmul.f32 %v3328_v0, %v155_v40  ;;  %v1223_v23 = vrot.slane %v3296_v9, %v3183_v55 }
 0x1db   :  { %v987_v3 = vsel %vm883_vm3, %v986_v48, %v982_v21  ;;  %678 = vadd.xlane.f32.xlu1 %v447_v52  ;;  %690 = vadd.xlane.f32.xlu0 %v453_v10  ;;  %v1213_v48 = vrot.slane %v3279_v38, %v3163_v14  ;;  %v156_v38 = vld [vmem:[#allocation2 + $0x3a0] sm:$0xff] }
 0x1dc   :  { %v992_v62 = vsel %vm890_vm4, %v991_v13, %v987_v3  ;;  %v543_v44 = vpop.xlane.xlu1 %542  ;;  %v3325_v63 = vpop.xlane.xlu0 %520  ;;  %v451_v13 = vmul.f32 %v3132_v51, %v147_v36  ;;  %v103_v3 = vld [vmem:[#allocation2 + $0x1f8] sm:$0xff] }
 0x1dd   :  { %v997_v2 = vsel %vm897_vm5, %v996_v57, %v992_v62  ;;  %v1065_v15 = vrot.slane %v543_v44, %v3183_v55  ;;  %v1228_v62 = vrot.slane %v3312_v43, %v3187_v59  ;;  %v407_v53 = vmul.f32 %v3115_v32, %v103_v3 }
 0x1de   :  { %v1011_v32 = vrot.slane %v3325_v63, %v3220_v33 }
 0x1df   :  { %680 = vadd.xlane.f32.xlu1 %v448_v1  ;;  %662 = vadd.xlane.f32.xlu0 %v439_v24  ;;  %v1066_v35 = vsel %vm883_vm3, %v1065_v15, %v1061_v58  ;;  %v157_v15 = vld [vmem:[#allocation2 + $0x3a8] sm:$0xff] }
 0x1e0   :  { %v3333_v6 = vpop.xlane.xlu0 %522  ;;  %v601_v7 = vpop.xlane.xlu1 %600 }
 0x1e1   :  { %v1209_v8 = vrot.slane %v601_v7, %v3158_v27  ;;  %v460_v7 = vmul.f32 %v3328_v0, %v156_v38 }
 0x1e3   :  { %682 = vadd.xlane.f32.xlu1 %v449_v11  ;;  %698 = vadd.xlane.f32.xlu0 %v457_v12  ;;  %v1214_v57 = vsel %vm869_vm1, %v1213_v48, %v1209_v8  ;;  %v133_v12 = vld [vmem:[#allocation2 + $0x2e8] sm:$0xff] }
 0x1e4   :  { %v3338_v21 = vpop.xlane.xlu0 %524  ;;  %v545_v22 = vpop.xlane.xlu1 %544 }
 0x1e5   :  { %v1070_v25 = vrot.slane %v545_v22, %v3187_v59  ;;  %v437_v22 = vmul.f32 %v3127_v46, %v133_v12  ;;  %v1021_v36 = vrot.slane %v3338_v21, %v3228_v39 }
 0x1e7   :  { %v1071_v45 = vsel %vm890_vm4, %v1070_v25, %v1066_v35  ;;  %684 = vadd.xlane.f32.xlu1 %v450_v26  ;;  %700 = vadd.xlane.f32.xlu0 %v458_v29  ;;  %v461_v25 = vmul.f32 %v3328_v0, %v157_v15  ;;  %v134_v29 = vld [vmem:[#allocation2 + $0x2f0] sm:$0xff]  ;;  %v1016_v35 = vrot.slane %v3333_v6, %v3223_v34 }
 0x1e8   :  { %v1076_v52 = vsel %vm897_vm5, %v1075_v20, %v1071_v45  ;;  %v527_v10 = vpop.xlane.xlu0 %526  ;;  %v605_v19 = vpop.xlane.xlu1 %604  ;;  %v158_v20 = vld [vmem:[#allocation2 + $0x3b0] sm:$0xff]  ;;  %v438_v48 = vmul.f32 %v3127_v46, %v134_v29  ;;  %v163_v29 = vld [vmem:[#allocation2 + $0x3d8] sm:$0xff] }
 0x1e9   :  { %v1218_v58 = vrot.slane %v605_v19, %v3171_v42  ;;  %v3357_v56 = vsel %vm904_vm6, %v1080_v41, %v1076_v52  ;;  %v1026_v63 = vrot.slane %v527_v10, %v3233_v47  ;;  %v462_v6 = vmul.f32 %v3328_v0, %v158_v20  ;;  %v150_v52 = vld [vmem:[#allocation2 + $0x370] sm:$0xff] }
 0x1ea   :  { %v454_v3 = vmul.f32 %v3132_v51, %v150_v52  ;;  %v167_v52 = vld [vmem:[#allocation2 + $0x3f8] sm:$0xff] }
 0x1eb   :  { %v1219_v44 = vsel %vm876_vm2, %v1218_v58, %v1214_v57  ;;  %686 = vadd.xlane.f32.xlu1 %v451_v13  ;;  %702 = vadd.xlane.f32.xlu0 %v459_v54  ;;  %v159_v13 = vld [vmem:[#allocation2 + $0x3b8] sm:$0xff] }
 0x1ec   :  { %v1224_v1 = vsel %vm883_vm3, %v1223_v23, %v1219_v44  ;;  %v529_v24 = vpop.xlane.xlu0 %528  ;;  %v517_v4 = vpop.xlane.xlu1 %516  ;;  %v463_v44 = vmul.f32 %v3328_v0, %v159_v13 }
 0x1ed   :  { %v3369_v9 = vsel %vm890_vm4, %v1228_v62, %v1224_v1  ;;  %v1001_v11 = vrot.slane %v517_v4, %v3199_v5  ;;  %v1031_v19 = vrot.slane %v529_v24, %v3237_v49  ;;  %v151_v24 = vld [vmem:[#allocation2 + $0x378] sm:$0xff]  ;;  %v160_v4 = vld [vmem:[#allocation2 + $0x3c0] sm:$0xff] }
 0x1ee   :  { %v455_v15 = vmul.f32 %v3132_v51, %v151_v24 }
 0x1ef   :  { %598 = vadd.xlane.f32.xlu1 %v407_v53  ;;  %704 = vadd.xlane.f32.xlu0 %v460_v7  ;;  %v1002_v26 = vsel %vm904_vm6, %v1001_v11, %v997_v2 }
 0x1f0   :  { %v531_v43 = vpop.xlane.xlu0 %530  ;;  %v519_v17 = vpop.xlane.xlu1 %518 }
 0x1f1   :  { %v1006_v18 = vrot.slane %v519_v17, %v3216_v28  ;;  %v1036_v21 = vrot.slane %v531_v43, %v3251_v61  ;;  %v464_v43 = vmul.f32 %v3328_v0, %v160_v4  ;;  %v161_v17 = vld [vmem:[#allocation2 + $0x3c8] sm:$0xff] }
 0x1f3   :  { %v1007_v8 = vsel %vm911_vm7, %v1006_v18, %v1002_v26  ;;  %658 = vadd.xlane.f32.xlu1 %v437_v22  ;;  %706 = vadd.xlane.f32.xlu0 %v461_v25  ;;  %v152_v18 = vld [vmem:[#allocation2 + $0x380] sm:$0xff]  ;;  %v162_v26 = vld [vmem:[#allocation2 + $0x3d0] sm:$0xff] }
 0x1f4   :  { %v1012_v40 = vsel %vm918_vm8, %v1011_v32, %v1007_v8  ;;  %v533_v41 = vpop.xlane.xlu0 %532  ;;  %v3384_v45 = vpop.xlane.xlu1 %550  ;;  %v465_v32 = vmul.f32 %v3328_v0, %v161_v17  ;;  %v467_v8 = vmul.f32 %v3328_v0, %v163_v29 }
 0x1f5   :  { %v1017_v2 = vsel %vm925_vm9, %v1016_v35, %v1012_v40  ;;  %v1041_v23 = vrot.slane %v533_v41, %v3266_v16  ;;  %v466_v35 = vmul.f32 %v3328_v0, %v162_v26  ;;  %v164_v40 = vld [vmem:[#allocation2 + $0x3e0] sm:$0xff] }
 0x1f6   :  { %v1022_v58 = vsel %vm932_vm10, %v1021_v36, %v1017_v2  ;;  %v165_v36 = vld [vmem:[#allocation2 + $0x3e8] sm:$0xff] }
 0x1f7   :  { %v1027_v54 = vsel %vm939_vm11, %v1026_v63, %v1022_v58  ;;  %660 = vadd.xlane.f32.xlu1 %v438_v48  ;;  %708 = vadd.xlane.f32.xlu0 %v462_v6  ;;  %v469_v2 = vmul.f32 %v3328_v0, %v165_v36  ;;  %v468_v48 = vmul.f32 %v3328_v0, %v164_v40  ;;  %v166_v6 = vld [vmem:[#allocation2 + $0x3f0] sm:$0xff] }
 0x1f8   :  { %v1032_v10 = vsel %vm4263_vm12, %v1031_v19, %v1027_v54  ;;  %v535_v57 = vpop.xlane.xlu0 %534  ;;  %v3396_v46 = vpop.xlane.xlu1 %610  ;;  %v470_v13 = vmul.f32 %v3328_v0, %v166_v6 }
 0x1f9   :  { %v1037_v38 = vsel %vm953_vm13, %v1036_v21, %v1032_v10  ;;  %v1046_v62 = vrot.slane %v535_v57, %v3276_v30  ;;  %v471_v21 = vmul.f32 %v3328_v0, %v167_v52 }
 0x1fa   :  { %v1042_v1 = vsel %vm960_vm14, %v1041_v23, %v1037_v38 }
 0x1fb   :  { %v1047_v53 = vsel %vm967_vm15, %v1046_v62, %v1042_v1  ;;  %692 = vadd.xlane.f32.xlu1 %v454_v3  ;;  %710 = vadd.xlane.f32.xlu0 %v463_v44 }
 0x1fc   :  { %v3406_v7 = vsel %vm4258_vm0, %v1047_v53, %v3285_v50  ;;  %v3408_v11 = vpop.xlane.xlu0 %628  ;;  %v553_v12 = vpop.xlane.xlu1 %552  ;;  %v456_v50 = vmul.f32 %v3328_v0, %v152_v18  ;;  %vm4262_vm0 = vcmask 1042434  }
 0x1fd   :  { %v1090_v17 = vrot.slane %v553_v12, %v3220_v33 }
 0x1ff   :  { %694 = vadd.xlane.f32.xlu1 %v455_v15  ;;  %712 = vadd.xlane.f32.xlu0 %v464_v43  ;;  %v1085_v43 = vrot.slane %v3384_v45, %v3216_v28 }
 0x200   :  { %v3412_v22 = vpop.xlane.xlu0 %630  ;;  %v3414_v25 = vpop.xlane.xlu1 %612 }
 0x201   :  { %v1086_v29 = vsel %vm911_vm7, %v1085_v43, %v3357_v56 }
 0x203   :  { %714 = vadd.xlane.f32.xlu0 %v465_v32  ;;  %696 = vadd.xlane.f32.xlu1 %v456_v50 }
 0x204   :  { %v3418_v20 = vpop.xlane.xlu0 %570  ;;  %v555_v51 = vpop.xlane.xlu1 %554 }
 0x205   :  { %v1095_v50 = vrot.slane %v555_v51, %v3223_v34 }
 0x207   :  { %716 = vadd.xlane.f32.xlu0 %v466_v35  ;;  %718 = vadd.xlane.f32.xlu1 %v467_v8  ;;  %v1091_v8 = vsel %vm918_vm8, %v1090_v17, %v1086_v29 }
 0x208   :  { %v3422_v41 = vpop.xlane.xlu0 %572  ;;  %v3424_v63 = vpop.xlane.xlu1 %614  ;;  %v1096_v12 = vsel %vm925_vm9, %v1095_v50, %v1091_v8 }
 0x20b   :  { %722 = vadd.xlane.f32.xlu0 %v469_v2  ;;  %720 = vadd.xlane.f32.xlu1 %v468_v48 }
 0x20c   :  { %v3428_v19 = vpop.xlane.xlu0 %574  ;;  %v557_v58 = vpop.xlane.xlu1 %556 }
 0x20d   :  { %v1100_v26 = vrot.slane %v557_v58, %v3228_v39 }
 0x20f   :  { %724 = vadd.xlane.f32.xlu0 %v470_v13  ;;  %726 = vadd.xlane.f32.xlu1 %v471_v21  ;;  %v1101_v51 = vsel %vm932_vm10, %v1100_v26, %v1096_v12 }
 0x210   :  { %v3432_v54 = vpop.xlane.xlu1 %616  ;;  %v3434_v10 = vpop.xlane.xlu0 %632 }
 0x214   :  { %v559_v23 = vpop.xlane.xlu1 %558  ;;  %v3436_v57 = vpop.xlane.xlu0 %664 }
 0x215   :  { %v1105_v35 = vrot.slane %v559_v23, %v3233_v47 }
 0x217   :  { %v1106_v56 = vsel %vm939_vm11, %v1105_v35, %v1101_v51 }
 0x218   :  { %v3438_v3 = vpop.xlane.xlu1 %618  ;;  %v3440_v38 = vpop.xlane.xlu0 %668 }
 0x219   :  { %4266 = vst [vmem:[#allocation14_spill] sm:$0xff] %v3440_v38 }
 0x21c   :  { %v561_v62 = vpop.xlane.xlu1 %560  ;;  %v3442_v44 = vpop.xlane.xlu0 %580 }
 0x21d   :  { %v1110_v36 = vrot.slane %v561_v62, %v3237_v49 }
 0x21f   :  { %v1111_v6 = vsel %vm4263_vm12, %v1110_v36, %v1106_v56 }
 0x220   :  { %v3444_v1 = vpop.xlane.xlu1 %620  ;;  %v3446_v24 = vpop.xlane.xlu0 %640 }
 0x224   :  { %v563_v0 = vpop.xlane.xlu1 %562  ;;  %v3448_v4 = vpop.xlane.xlu0 %582 }
 0x225   :  { %v1115_v2 = vrot.slane %v563_v0, %v3251_v61 }
 0x227   :  { %v1116_v13 = vsel %vm953_vm13, %v1115_v2, %v1111_v6 }
 0x228   :  { %v3450_v53 = vpop.xlane.xlu1 %622  ;;  %v3452_v15 = vpop.xlane.xlu0 %642 }
 0x22c   :  { %v565_v18 = vpop.xlane.xlu1 %564  ;;  %v3457_v32 = vpop.xlane.xlu0 %584 }
 0x22d   :  { %v1120_v48 = vrot.slane %v565_v18, %v3266_v16 }
 0x22f   :  { %v1121_v23 = vsel %vm960_vm14, %v1120_v48, %v1116_v13 }
 0x230   :  { %v3466_v40 = vpop.xlane.xlu1 %624  ;;  %v3468_v45 = vpop.xlane.xlu0 %644 }
 0x234   :  { %v567_v52 = vpop.xlane.xlu1 %566  ;;  %v587_v58 = vpop.xlane.xlu0 %586 }
 0x235   :  { %v1125_v21 = vrot.slane %v567_v52, %v3276_v30 }
 0x237   :  { %v1126_v62 = vsel %vm967_vm15, %v1125_v21, %v1121_v23  ;;  %v1134_v23 = vrot.slane %v3418_v20, %v3163_v14  ;;  %v1144_v20 = vrot.slane %v3428_v19, %v3183_v55 }
 0x238   :  { %v3482_v0 = vsel %vm4262_vm0, %v1126_v62, %v3406_v7  ;;  %v3484_v43 = vpop.xlane.xlu1 %626  ;;  %v3486_v17 = vpop.xlane.xlu0 %646  ;;  %vm1526_vm0 = vcmask 1043459  }
 0x23c   :  { %v569_v18 = vpop.xlane.xlu1 %568  ;;  %v589_v50 = vpop.xlane.xlu0 %588 }
 0x23d   :  { %v1130_v21 = vrot.slane %v569_v18, %v3158_v27 }
 0x23f   :  { %v1135_v31 = vsel %vm869_vm1, %v1134_v23, %v1130_v21 }
 0x240   :  { %v3488_v26 = vpop.xlane.xlu1 %634  ;;  %v3490_v29 = vpop.xlane.xlu0 %648 }
 0x241   :  { %4267 = vst [vmem:[#allocation15_spill] sm:$0xff] %v3490_v29 }
 0x244   :  { %v577_v35 = vpop.xlane.xlu1 %576  ;;  %v3492_v8 = vpop.xlane.xlu0 %590 }
 0x245   :  { %v1149_v29 = vrot.slane %v577_v35, %v3187_v59  ;;  %v1159_v35 = vrot.slane %v3442_v44, %v3199_v5  ;;  %v1233_v44 = vrot.slane %v3396_v46, %v3190_v60 }
 0x247   :  { %v1234_v46 = vsel %vm897_vm5, %v1233_v44, %v3369_v9  ;;  %v1184_v44 = vrot.slane %v3492_v8, %v3233_v47 }
 0x248   :  { %v3494_v36 = vpop.xlane.xlu1 %636  ;;  %v3496_v12 = vpop.xlane.xlu0 %650 }
 0x249   :  { %4268 = vst [vmem:[#allocation16_spill] sm:$0xff] %v3496_v12 }
 0x24c   :  { %v3498_v2 = vpop.xlane.xlu1 %666  ;;  %v3500_v7 = vpop.xlane.xlu0 %592 }
 0x24d   :  { %v1189_v8 = vrot.slane %v3500_v7, %v3237_v49  ;;  %v1278_v7 = vrot.slane %v3408_v11, %v3266_v16  ;;  %v1283_v11 = vrot.slane %v3412_v22, %v3276_v30  ;;  %v1312_v22 = vrot.slane %v3452_v15, %v3190_v60 }
 0x24e   :  { %v1367_v15 = vrot.slane %v3436_v57, %v3158_v27 }
 0x250   :  { %v579_v51 = vpop.xlane.xlu1 %578  ;;  %v3502_v48 = vpop.xlane.xlu0 %652 }
 0x251   :  { %4269 = vst [vmem:[#allocation17_spill] sm:$0xff] %v3502_v48  ;;  %v1139_v48 = vrot.slane %v3422_v41, %v3171_v42  ;;  %v1154_v18 = vrot.slane %v579_v51, %v3190_v60  ;;  %v1169_v51 = vrot.slane %v3457_v32, %v3220_v33 }
 0x253   :  { %v1140_v12 = vsel %vm876_vm2, %v1139_v48, %v1135_v31 }
 0x254   :  { %v3504_v56 = vpop.xlane.xlu1 %638  ;;  %v3506_v6 = vpop.xlane.xlu0 %594 }
 0x258   :  { %v3508_v52 = vpop.xlane.xlu1 %670  ;;  %v3510_v13 = vpop.xlane.xlu0 %654 }
 0x259   :  { %4270 = vst [vmem:[#allocation18_spill] sm:$0xff] %v3510_v13 }
 0x25c   :  { %v3515_v62 = vpop.xlane.xlu1 %672  ;;  %v3517_v37 = vpop.xlane.xlu0 %596 }
 0x25d   :  { %4271 = vst [vmem:[#allocation19_spill] sm:$0xff] %v3515_v62  ;;  %v1145_v62 = vsel %vm883_vm3, %v1144_v20, %v1140_v12  ;;  %v1164_v12 = vrot.slane %v3448_v4, %v3216_v28  ;;  %v1243_v4 = vrot.slane %v3424_v63, %v3216_v28  ;;  %v1258_v63 = vrot.slane %v3444_v1, %v3228_v39 }
 0x25e   :  { %v1150_v21 = vsel %vm890_vm4, %v1149_v29, %v1145_v62 }
 0x25f   :  { %v1155_v31 = vsel %vm897_vm5, %v1154_v18, %v1150_v21  ;;  %v1238_v21 = vrot.slane %v3414_v25, %v3199_v5  ;;  %v1253_v25 = vrot.slane %v3438_v3, %v3223_v34 }
 0x260   :  { %v3524_v38 = vpop.xlane.xlu1 %674  ;;  %v3526_v13 = vpop.xlane.xlu0 %656  ;;  %v1160_v48 = vsel %vm904_vm6, %v1159_v35, %v1155_v31  ;;  %v1174_v31 = vrot.slane %v587_v58, %v3223_v34  ;;  %v1179_v58 = vrot.slane %v589_v50, %v3228_v39  ;;  %v1268_v50 = vrot.slane %v3466_v40, %v3237_v49 }
 0x261   :  { %4272 = vst [vmem:[#allocation20_spill] sm:$0xff] %v3526_v13  ;;  %v1165_v29 = vsel %vm911_vm7, %v1164_v12, %v1160_v48  ;;  %v1248_v48 = vrot.slane %v3432_v54, %v3220_v33  ;;  %v1263_v54 = vrot.slane %v3450_v53, %v3233_v47  ;;  %v1297_v40 = vrot.slane %v3494_v36, %v3171_v42 }
 0x262   :  { %v1170_v18 = vsel %vm918_vm8, %v1169_v51, %v1165_v29  ;;  %v1239_v29 = vsel %vm904_vm6, %v1238_v21, %v1234_v46  ;;  %v1273_v21 = vrot.slane %v3484_v43, %v3251_v61  ;;  %v1288_v43 = vrot.slane %v3434_v10, %v3158_v27 }
 0x263   :  { %v1175_v12 = vsel %vm925_vm9, %v1174_v31, %v1170_v18  ;;  %v1244_v51 = vsel %vm911_vm7, %v1243_v4, %v1239_v29  ;;  %v1292_v4 = vrot.slane %v3488_v26, %v3163_v14  ;;  %v1302_v26 = vrot.slane %v3504_v56, %v3183_v55 }
 0x264   :  { %v3533_v23 = vpop.xlane.xlu1 %676  ;;  %v3535_v41 = vpop.xlane.xlu0 %688  ;;  %v1180_v18 = vsel %vm932_vm10, %v1179_v58, %v1175_v12  ;;  %v1249_v3 = vsel %vm918_vm8, %v1248_v48, %v1244_v51  ;;  %v1199_v36 = vrot.slane %v3517_v37, %v3266_v16  ;;  %v1194_v10 = vrot.slane %v3506_v6, %v3251_v61 }
 0x265   :  { %v1254_v1 = vsel %vm925_vm9, %v1253_v25, %v1249_v3  ;;  %v1185_v12 = vsel %vm939_vm11, %v1184_v44, %v1180_v18  ;;  %v1293_v51 = vsel %vm869_vm1, %v1292_v4, %v1288_v43  ;;  %v1307_v6 = vrot.slane %v3446_v24, %v3187_v59 }
 0x266   :  { %v1259_v53 = vsel %vm932_vm10, %v1258_v63, %v1254_v1  ;;  %v1190_v63 = vsel %vm4263_vm12, %v1189_v8, %v1185_v12  ;;  %v1317_v43 = vrot.slane %v3468_v45, %v3199_v5 }
 0x267   :  { %v1264_v48 = vsel %vm939_vm11, %v1263_v54, %v1259_v53  ;;  %v1298_v54 = vsel %vm876_vm2, %v1297_v40, %v1293_v51  ;;  %v1195_v37 = vsel %vm953_vm13, %v1194_v10, %v1190_v63  ;;  %v1322_v63 = vrot.slane %v3486_v17, %v3216_v28 }
 0x268   :  { %v3541_v13 = vpop.xlane.xlu1 %678  ;;  %v3543_v19 = vpop.xlane.xlu0 %690  ;;  %v1269_v58 = vsel %vm4263_vm12, %v1268_v50, %v1264_v48  ;;  %v1303_v50 = vsel %vm883_vm3, %v1302_v26, %v1298_v54  ;;  %v1200_v1 = vsel %vm960_vm14, %v1199_v36, %v1195_v37  ;;  %vm1528_vm12 = vcmask 1044484  }
 0x269   :  { %v1274_v29 = vsel %vm953_vm13, %v1273_v21, %v1269_v58  ;;  %v1308_v4 = vsel %vm890_vm4, %v1307_v6, %v1303_v50  ;;  %v1381_v51 = vrot.slane %v3508_v52, %v3183_v55  ;;  %v1391_v50 = vrot.slane %v3524_v38, %v3190_v60 }
 0x26a   :  { %v1279_v3 = vsel %vm960_vm14, %v1278_v7, %v1274_v29  ;;  %v1313_v8 = vsel %vm897_vm5, %v1312_v22, %v1308_v4  ;;  %v1396_v52 = vrot.slane %v3533_v23, %v3199_v5  ;;  %v1401_v4 = vrot.slane %v3541_v13, %v3216_v28 }
 0x26b   :  { %v1284_v53 = vsel %vm967_vm15, %v1283_v11, %v1279_v3  ;;  %v1318_v29 = vsel %vm904_vm6, %v1317_v43, %v1313_v8  ;;  %v4275_v3 = vld [vmem:[#allocation19_spill] sm:$0xff]  ;;  %v4277_v43 = vld [vmem:[#allocation17_spill] sm:$0xff] }
 0x26c   :  { %v3550_v62 = vpop.xlane.xlu1 %680  ;;  %v3552_v20 = vpop.xlane.xlu0 %662  ;;  %v1323_v10 = vsel %vm911_vm7, %v1322_v63, %v1318_v29  ;;  %v1386_v17 = vrot.slane %v4275_v3, %v3187_v59 }
 0x270   :  { %v3562_v35 = vpop.xlane.xlu1 %682  ;;  %v3564_v32 = vpop.xlane.xlu0 %698 }
 0x271   :  { %v1411_v8 = vrot.slane %v3562_v35, %v3223_v34 }
 0x274   :  { %v3581_v31 = vpop.xlane.xlu1 %684  ;;  %v3583_v9 = vpop.xlane.xlu0 %700 }
 0x275   :  { %v1416_v13 = vrot.slane %v3581_v31, %v3228_v39  ;;  %v1455_v31 = vrot.slane %v3583_v9, %v3171_v42 }
 0x278   :  { %v3602_v46 = vpop.xlane.xlu1 %686  ;;  %v3604_v25 = vpop.xlane.xlu0 %702 }
 0x27c   :  { %v599_v18 = vpop.xlane.xlu1 %598  ;;  %v3621_v56 = vpop.xlane.xlu0 %704 }
 0x27d   :  { %v1204_v44 = vrot.slane %v599_v18, %v3276_v30  ;;  %v4274_v18 = vld [vmem:[#allocation15_spill] sm:$0xff] }
 0x27e   :  { %v1327_v57 = vrot.slane %v4274_v18, %v3220_v33 }
 0x27f   :  { %v1205_v21 = vsel %vm967_vm15, %v1204_v44, %v1200_v1  ;;  %v4276_v1 = vld [vmem:[#allocation16_spill] sm:$0xff] }
 0x280   :  { %v1527_v12 = vsel %vm1526_vm0, %v1205_v21, %v3482_v0  ;;  %v3637_v48 = vpop.xlane.xlu1 %658  ;;  %v3639_v40 = vpop.xlane.xlu0 %706  ;;  %v1371_v0 = vrot.slane %v3498_v2, %v3163_v14  ;;  %v4273_v2 = vld [vmem:[#allocation14_spill] sm:$0xff]  ;;  %v1328_v44 = vsel %vm918_vm8, %v1327_v57, %v1323_v10  ;;  %v1332_v21 = vrot.slane %v4276_v1, %v3223_v34  ;;  %v4279_v57 = vld [vmem:[#allocation20_spill] sm:$0xff] }
 0x281   :  { %v3644_v24 = vsel %vm1528_vm12, %v1284_v53, %v1527_v12  ;;  %v1376_v54 = vrot.slane %v4273_v2, %v3171_v42  ;;  %v1406_v12 = vrot.slane %v3550_v62, %v3220_v33  ;;  %v1450_v62 = vrot.slane %v3564_v32, %v3163_v14  ;;  %v4278_v2 = vld [vmem:[#allocation18_spill] sm:$0xff] }
 0x282   :  { %v1372_v45 = vsel %vm869_vm1, %v1371_v0, %v1367_v15  ;;  %v1333_v22 = vsel %vm925_vm9, %v1332_v21, %v1328_v44  ;;  %v1337_v0 = vrot.slane %v4277_v43, %v3228_v39  ;;  %v1347_v3 = vrot.slane %v4279_v57, %v3237_v49 }
 0x283   :  { %v1377_v37 = vsel %vm876_vm2, %v1376_v54, %v1372_v45  ;;  %v1342_v54 = vrot.slane %v4278_v2, %v3233_v47  ;;  %v1460_v32 = vrot.slane %v3604_v25, %v3183_v55 }
 0x284   :  { %v3649_v58 = vpop.xlane.xlu1 %660  ;;  %v3651_v26 = vpop.xlane.xlu0 %708  ;;  %v1382_v53 = vsel %vm883_vm3, %v1381_v51, %v1377_v37  ;;  %v1421_v51 = vrot.slane %v3602_v46, %v3233_v47  ;;  %v1338_v10 = vsel %vm932_vm10, %v1337_v0, %v1333_v22 }
 0x285   :  { %v1387_v38 = vsel %vm890_vm4, %v1386_v17, %v1382_v53  ;;  %v1465_v17 = vrot.slane %v3621_v56, %v3187_v59  ;;  %v1357_v55 = vrot.slane %v3649_v58, %v3266_v16  ;;  %v1343_v1 = vsel %vm939_vm11, %v1342_v54, %v1338_v10 }
 0x286   :  { %v1392_v23 = vsel %vm897_vm5, %v1391_v50, %v1387_v38  ;;  %v1352_v50 = vrot.slane %v3637_v48, %v3251_v61  ;;  %v1426_v59 = vrot.slane %v3535_v41, %v3237_v49  ;;  %v1475_v56 = vrot.slane %v3651_v26, %v3199_v5 }
 0x287   :  { %v1397_v29 = vsel %vm904_vm6, %v1396_v52, %v1392_v23  ;;  %v1470_v52 = vrot.slane %v3639_v40, %v3190_v60  ;;  %v1431_v60 = vrot.slane %v3543_v19, %v3251_v61 }
 0x288   :  { %v3660_v36 = vpop.xlane.xlu1 %692  ;;  %v3662_v7 = vpop.xlane.xlu0 %710  ;;  %v1402_v45 = vsel %vm911_vm7, %v1401_v4, %v1397_v29 }
 0x289   :  { %v1407_v18 = vsel %vm918_vm8, %v1406_v12, %v1402_v45  ;;  %v1480_v40 = vrot.slane %v3662_v7, %v3216_v28  ;;  %v1436_v19 = vrot.slane %v3660_v36, %v3266_v16  ;;  %v1362_v7 = vrot.slane %v3552_v20, %v3276_v30 }
 0x28a   :  { %v1412_v14 = vsel %vm925_vm9, %v1411_v8, %v1407_v18 }
 0x28b   :  { %v1417_v46 = vsel %vm932_vm10, %v1416_v13, %v1412_v14 }
 0x28c   :  { %v3680_v11 = vpop.xlane.xlu1 %694  ;;  %v713_v6 = vpop.xlane.xlu0 %712  ;;  %v1422_v44 = vsel %vm939_vm11, %v1421_v51, %v1417_v46 }
 0x28d   :  { %v1485_v41 = vrot.slane %v713_v6, %v3220_v33  ;;  %v1441_v23 = vrot.slane %v3680_v11, %v3276_v30 }
 0x290   :  { %v715_v15 = vpop.xlane.xlu0 %714  ;;  %v697_v63 = vpop.xlane.xlu1 %696 }
 0x291   :  { %v1446_v35 = vrot.slane %v697_v63, %v3158_v27  ;;  %v1490_v22 = vrot.slane %v715_v15, %v3223_v34 }
 0x293   :  { %v1451_v27 = vsel %vm869_vm1, %v1450_v62, %v1446_v35  ;;  %vm4280_vm1 = vcmask 851712  }
 0x294   :  { %v1456_v42 = vsel %vm876_vm2, %v1455_v31, %v1451_v27  ;;  %v717_v9 = vpop.xlane.xlu0 %716  ;;  %v719_v37 = vpop.xlane.xlu1 %718  ;;  %v1348_v21 = vsel %vm4280_vm1, %v1347_v3, %v1343_v1  ;;  %vm4281_vm2 = vmmov %vm4280_vm1  ;;  %v4283_v27 = vld [vmem:[#allocation12_spill] sm:$0xff] }
 0x295   :  { %v1461_v25 = vsel %vm883_vm3, %v1460_v32, %v1456_v42  ;;  %v1427_v53 = vsel %vm4281_vm2, %v1426_v59, %v1422_v44  ;;  %v1353_v4 = vsel %vm953_vm13, %v1352_v50, %v1348_v21  ;;  %v1495_v6 = vrot.slane %v717_v9, %v3228_v39 }
 0x296   :  { %v1466_v48 = vsel %vm890_vm4, %v1465_v17, %v1461_v25  ;;  %v1358_v12 = vsel %vm960_vm14, %v1357_v55, %v1353_v4  ;;  %v1500_v43 = vrot.slane %v719_v37, %v3233_v47  ;;  %vm1530_vm3 = vcmask 1045509   ;;  %v728_v47 = vld [vmem:[%s4252_s2] sm:$0xff]  ;;  %vm4282_vm4 = vmmov %vm4280_vm1 }
 0x297   :  { %v1471_v58 = vsel %vm897_vm5, %v1470_v52, %v1466_v48  ;;  %v1363_v36 = vsel %vm967_vm15, %v1362_v7, %v1358_v12  ;;  %v1432_v34 = vsel %vm953_vm13, %v1431_v60, %v1427_v53  ;;  %vm1532_vm5 = vcmask 1046534   ;;  %v4284_v17 = vld [vmem:[#allocation13_spill] sm:$0xff] }
 0x298   :  { %v1476_v5 = vsel %vm904_vm6, %v1475_v56, %v1471_v58  ;;  %v723_v26 = vpop.xlane.xlu0 %722  ;;  %v721_v38 = vpop.xlane.xlu1 %720  ;;  %v1437_v11 = vsel %vm960_vm14, %v1436_v19, %v1432_v34  ;;  %vm1534_vm6 = vcmask 1047559   ;;  %v1683_v46 = vsub.s32 2, %v4283_v27 }
 0x299   :  { %v1481_v28 = vsel %vm911_vm7, %v1480_v40, %v1476_v5  ;;  %v1505_v20 = vrot.slane %v721_v38, %v3237_v49  ;;  %v1510_v39 = vrot.slane %v723_v26, %v3251_v61  ;;  %v1442_v45 = vsel %vm967_vm15, %v1441_v23, %v1437_v11 }
 0x29a   :  { %v1486_v33 = vsel %vm918_vm8, %v1485_v41, %v1481_v28  ;;  %vm729_vm7 = vcmp.ne.s32.totalorder %v728_v47, 0  ;;  %v1531_v61 = vsel %vm1530_vm3, %v1363_v36, %v3644_v24  ;;  %v1616_v24 = vsub.s32 1, %v4283_v27 }
 0x29b   :  { %v1491_v8 = vsel %vm925_vm9, %v1490_v22, %v1486_v33  ;;  %v1533_v10 = vsel %vm1532_vm5, %v1442_v45, %v1531_v61  ;;  %v1750_v37 = vsub.s32 3, %v4283_v27  ;;  %v1817_v52 = vsub.s32 4, %v4283_v27 }
 0x29c   :  { %v1496_v0 = vsel %vm932_vm10, %v1495_v6, %v1491_v8  ;;  %v725_v29 = vpop.xlane.xlu0 %724  ;;  %v727_v13 = vpop.xlane.xlu1 %726  ;;  %v1884_v25 = vsub.s32 5, %v4283_v27  ;;  %v1951_v59 = vsub.s32 6, %v4283_v27  ;;  %v2018_v48 = vsub.s32 7, %v4283_v27 }
 0x29d   :  { %v1501_v15 = vsel %vm939_vm11, %v1500_v43, %v1496_v0  ;;  %v1515_v63 = vrot.slane %v725_v29, %v3266_v16  ;;  %v1520_v51 = vrot.slane %v727_v13, %v3276_v30  ;;  %vm4285_vm8 = vcmask 1041409  }
 0x29e   :  { %v1506_v62 = vsel %vm4282_vm4, %v1505_v20, %v1501_v15  ;;  %vm4286_vm9 = vcmask 1042434  }
 0x29f   :  { %v1511_v49 = vsel %vm953_vm13, %v1510_v39, %v1506_v62 }
 0x2a0   :  { %v1516_v35 = vsel %vm960_vm14, %v1515_v63, %v1511_v49  ;;  %v2702_v49 = vld [vmem:[#allocation2 + $0x88] sm:$0xff] }
 0x2a1   :  { %v1521_v16 = vsel %vm967_vm15, %v1520_v51, %v1516_v35 }
 0x2a2   :  { %v1535_v2 = vsel %vm1534_vm6, %v1521_v16, %v1533_v10  ;;  %v2703_v16 = vld [vmem:[#allocation2 + $0x8] sm:$0xff] }
 0x2a3   :  { %v1537_v54 = vsel %vm729_vm7, %v1535_v2, -inf  ;;  %v2704_v2 = vld [vmem:[#allocation2] sm:$0xff] }
 0x2a4   :  { %1538 = vmax.xlane.f32.xlu0 %v1537_v54 }
 0x331   :  { %v1539_v18 = vpop.xlane.xlu0 %1538 }
 0x332   :  { %v1540_v31 = vsub.f32 %v1537_v54, %v1539_v18  ;;  %v2705_v18 = vld [vmem:[#allocation2 + $0x80] sm:$0xff] }
 0x334   :  { %v1541_v57 = vmul.f32 1.442695, %v1540_v31 }
 0x336   :  { %2696 = vpow2.f32 %v1541_v57  ;;  %v2706_v57 = vld [vmem:[#allocation2 + $0x90] sm:$0xff] }
 0x340   :  { %v2697_v30 = vpop.eup %2696 }
 0x341   :  { %1543 = vadd.xlane.f32.xlu1 %v2697_v30 }
 0x3ce   :  { %v1544_v3 = vpop.xlane.xlu1 %1543 }
 0x3cf   :  { %2698 = vrcp.f32 %v1544_v3  ;;  %v2707_v3 = vld [vmem:[#allocation2 + $0x10] sm:$0xff] }
 0x3d9   :  { %v2699_v14 = vpop.eup %2698 }
 0x3da   :  { %v1546_v32 = vmul.f32 %v2699_v14, %v2697_v30 }
 0x3dc   :  { %v3782_v50 = vrot.slane %v1546_v32, %v4284_v17  ;;  %2499 = vst [vmem:[#allocation6] sm:$0xff] %v1546_v32  ;;  %v3786_v42 = vrot.slane %v1546_v32, %v1616_v24  ;;  %v3788_v9 = vrot.slane %v1546_v32, %v1683_v46  ;;  %v3795_v44 = vrot.slane %v1546_v32, %v1750_v37  ;;  %v2709_v46 = vld [vmem:[#allocation2 + $0x108] sm:$0xff]  ;;  %v2710_v37 = vld [vmem:[#allocation2 + $0x98] sm:$0xff] }
 0x3dd   :  { %v3802_v55 = vrot.slane %v1546_v32, %v1817_v52  ;;  %v3809_v1 = vrot.slane %v1546_v32, %v1884_v25  ;;  %v3816_v56 = vrot.slane %v1546_v32, %v1951_v59  ;;  %v3825_v21 = vrot.slane %v1546_v32, %v2018_v48  ;;  %v2708_v32 = vld [vmem:[#allocation2 + $0x308] sm:$0xff] }
 0x3de   :  { %1556 = vbcast.lane.b32.xlu1 %v3782_v50, 264  ;;  %1552 = vbcast.lane.b32.xlu0 %v3782_v50, 256 }
 0x3e2   :  { %1619 = vbcast.lane.b32.xlu1 %v3786_v42, 256  ;;  %1686 = vbcast.lane.b32.xlu0 %v3788_v9, 256 }
 0x3e6   :  { %1623 = vbcast.lane.b32.xlu1 %v3786_v42, 264  ;;  %1560 = vbcast.lane.b32.xlu0 %v3782_v50, 272 }
 0x3ea   :  { %1690 = vbcast.lane.b32.xlu1 %v3788_v9, 264  ;;  %1753 = vbcast.lane.b32.xlu0 %v3795_v44, 256 }
 0x3ee   :  { %1627 = vbcast.lane.b32.xlu1 %v3786_v42, 272  ;;  %1694 = vbcast.lane.b32.xlu0 %v3788_v9, 272 }
 0x3f2   :  { %1757 = vbcast.lane.b32.xlu1 %v3795_v44, 264  ;;  %1824 = vbcast.lane.b32.xlu0 %v3802_v55, 264 }
 0x3f6   :  { %1820 = vbcast.lane.b32.xlu1 %v3802_v55, 256  ;;  %1631 = vbcast.lane.b32.xlu0 %v3786_v42, 280 }
 0x3fa   :  { %1564 = vbcast.lane.b32.xlu1 %v3782_v50, 280  ;;  %1887 = vbcast.lane.b32.xlu0 %v3809_v1, 256 }
 0x3fe   :  { %1761 = vbcast.lane.b32.xlu1 %v3795_v44, 272  ;;  %1698 = vbcast.lane.b32.xlu0 %v3788_v9, 280 }
 0x402   :  { %1891 = vbcast.lane.b32.xlu1 %v3809_v1, 264  ;;  %1954 = vbcast.lane.b32.xlu0 %v3816_v56, 256 }
 0x406   :  { %1828 = vbcast.lane.b32.xlu1 %v3802_v55, 272  ;;  %1568 = vbcast.lane.b32.xlu0 %v3782_v50, 288 }
 0x40a   :  { %1958 = vbcast.lane.b32.xlu1 %v3816_v56, 264  ;;  %1765 = vbcast.lane.b32.xlu0 %v3795_v44, 280 }
 0x40e   :  { %1635 = vbcast.lane.b32.xlu1 %v3786_v42, 288  ;;  %2021 = vbcast.lane.b32.xlu0 %v3825_v21, 256 }
 0x412   :  { %1895 = vbcast.lane.b32.xlu1 %v3809_v1, 272  ;;  %1702 = vbcast.lane.b32.xlu0 %v3788_v9, 288 }
 0x416   :  { %2025 = vbcast.lane.b32.xlu1 %v3825_v21, 264  ;;  %1962 = vbcast.lane.b32.xlu0 %v3816_v56, 272 }
 0x41a   :  { %1832 = vbcast.lane.b32.xlu1 %v3802_v55, 280  ;;  %1639 = vbcast.lane.b32.xlu0 %v3786_v42, 296 }
 0x41e   :  { %1572 = vbcast.lane.b32.xlu1 %v3782_v50, 296  ;;  %1899 = vbcast.lane.b32.xlu0 %v3809_v1, 280 }
 0x422   :  { %1769 = vbcast.lane.b32.xlu1 %v3795_v44, 288  ;;  %1706 = vbcast.lane.b32.xlu0 %v3788_v9, 296 }
 0x426   :  { %2029 = vbcast.lane.b32.xlu1 %v3825_v21, 272  ;;  %1966 = vbcast.lane.b32.xlu0 %v3816_v56, 280 }
 0x42a   :  { %1836 = vbcast.lane.b32.xlu1 %v3802_v55, 288  ;;  %1643 = vbcast.lane.b32.xlu0 %v3786_v42, 304 }
 0x42e   :  { %1576 = vbcast.lane.b32.xlu1 %v3782_v50, 304  ;;  %1903 = vbcast.lane.b32.xlu0 %v3809_v1, 288 }
 0x432   :  { %1773 = vbcast.lane.b32.xlu1 %v3795_v44, 296  ;;  %1710 = vbcast.lane.b32.xlu0 %v3788_v9, 304 }
 0x436   :  { %2033 = vbcast.lane.b32.xlu1 %v3825_v21, 280  ;;  %1970 = vbcast.lane.b32.xlu0 %v3816_v56, 288 }
 0x43a   :  { %1840 = vbcast.lane.b32.xlu1 %v3802_v55, 296  ;;  %1647 = vbcast.lane.b32.xlu0 %v3786_v42, 312 }
 0x43e   :  { %1580 = vbcast.lane.b32.xlu1 %v3782_v50, 312  ;;  %1907 = vbcast.lane.b32.xlu0 %v3809_v1, 296 }
 0x442   :  { %1777 = vbcast.lane.b32.xlu1 %v3795_v44, 304  ;;  %1714 = vbcast.lane.b32.xlu0 %v3788_v9, 312 }
 0x446   :  { %2037 = vbcast.lane.b32.xlu1 %v3825_v21, 288  ;;  %1974 = vbcast.lane.b32.xlu0 %v3816_v56, 296 }
 0x44a   :  { %1844 = vbcast.lane.b32.xlu1 %v3802_v55, 304  ;;  %1651 = vbcast.lane.b32.xlu0 %v3786_v42, 320 }
 0x44e   :  { %1584 = vbcast.lane.b32.xlu1 %v3782_v50, 320  ;;  %1911 = vbcast.lane.b32.xlu0 %v3809_v1, 304 }
 0x450   :  { %v3861_v60 = vpop.permute.xlu1 %1556  ;;  %v3863_v40 = vpop.permute.xlu0 %1552 }
 0x451   :  { %v2084_v10 = vmul.f32 %v2703_v16, %v3861_v60  ;;  %v2083_v54 = vmul.f32 %v2704_v2, %v3863_v40  ;;  %v2711_v60 = vld [vmem:[#allocation2 + $0x300] sm:$0xff] }
 0x452   :  { %1781 = vbcast.lane.b32.xlu1 %v3795_v44, 312  ;;  %1718 = vbcast.lane.b32.xlu0 %v3788_v9, 320  ;;  %v2715_v16 = vld [vmem:[#allocation2 + $0xa0] sm:$0xff] }
 0x453   :  { %v2211_v48 = vadd.f32 %v2084_v10, %v2083_v54  ;;  %v2716_v54 = vld [vmem:[#allocation2 + $0x180] sm:$0xff] }
 0x454   :  { %v3867_v58 = vpop.permute.xlu1 %1619  ;;  %v3869_v53 = vpop.permute.xlu0 %1686 }
 0x455   :  { %v2099_v31 = vmul.f32 %v2705_v18, %v3867_v58  ;;  %v2712_v58 = vld [vmem:[#allocation2 + $0x310] sm:$0xff]  ;;  %v2717_v18 = vld [vmem:[#allocation2 + $0x18] sm:$0xff] }
 0x456   :  { %2041 = vbcast.lane.b32.xlu1 %v3825_v21, 296  ;;  %1978 = vbcast.lane.b32.xlu0 %v3816_v56, 304 }
 0x458   :  { %v1624_v4 = vpop.permute.xlu1 %1623  ;;  %v3873_v41 = vpop.permute.xlu0 %1560 }
 0x459   :  { %v2100_v51 = vmul.f32 %v2702_v49, %v1624_v4  ;;  %v2085_v14 = vmul.f32 %v2707_v3, %v3873_v41 }
 0x45a   :  { %1848 = vbcast.lane.b32.xlu1 %v3802_v55, 312  ;;  %1655 = vbcast.lane.b32.xlu0 %v3786_v42, 328 }
 0x45b   :  { %v2232_v24 = vadd.f32 %v2100_v51, %v2099_v31 }
 0x45c   :  { %v3877_v5 = vpop.permute.xlu1 %1690  ;;  %v3879_v26 = vpop.permute.xlu0 %1753 }
 0x45d   :  { %v2116_v17 = vmul.f32 %v2709_v46, %v3877_v5  ;;  %v2212_v5 = vadd.f32 %v2211_v48, %v2085_v14  ;;  %v2721_v46 = vld [vmem:[#allocation2 + $0x188] sm:$0xff]  ;;  %v2724_v48 = vld [vmem:[#allocation2 + $0x290] sm:$0xff] }
 0x45e   :  { %1588 = vbcast.lane.b32.xlu1 %v3782_v50, 328  ;;  %1915 = vbcast.lane.b32.xlu0 %v3809_v1, 312 }
 0x460   :  { %v1628_v38 = vpop.permute.xlu1 %1627  ;;  %v3883_v12 = vpop.permute.xlu0 %1694 }
 0x461   :  { %v2101_v30 = vmul.f32 %v2706_v57, %v1628_v38  ;;  %v2713_v38 = vld [vmem:[#allocation2 + $0x100] sm:$0xff] }
 0x462   :  { %1785 = vbcast.lane.b32.xlu1 %v3795_v44, 320  ;;  %1722 = vbcast.lane.b32.xlu0 %v3788_v9, 328  ;;  %v2115_v41 = vmul.f32 %v2713_v38, %v3869_v53  ;;  %v2727_v38 = vld [vmem:[#allocation2 + $0x28] sm:$0xff] }
 0x463   :  { %v2233_v49 = vadd.f32 %v2232_v24, %v2101_v30 }
 0x464   :  { %v3887_v19 = vpop.permute.xlu1 %1757  ;;  %v3889_v22 = vpop.permute.xlu0 %1824  ;;  %v2253_v10 = vadd.f32 %v2116_v17, %v2115_v41 }
 0x465   :  { %v2132_v17 = vmul.f32 %v2721_v46, %v3887_v19  ;;  %v2735_v46 = vld [vmem:[#allocation2 + $0x2a0] sm:$0xff] }
 0x466   :  { %2045 = vbcast.lane.b32.xlu1 %v3825_v21, 304  ;;  %1982 = vbcast.lane.b32.xlu0 %v3816_v56, 312 }
 0x468   :  { %v3893_v28 = vpop.permute.xlu1 %1820  ;;  %v1632_v7 = vpop.permute.xlu0 %1631 }
 0x469   :  { %v2102_v52 = vmul.f32 %v2710_v37, %v1632_v7 }
 0x46a   :  { %1852 = vbcast.lane.b32.xlu1 %v3802_v55, 320  ;;  %1659 = vbcast.lane.b32.xlu0 %v3786_v42, 336 }
 0x46c   :  { %v3897_v23 = vpop.permute.xlu1 %1564  ;;  %v3899_v33 = vpop.permute.xlu0 %1887 }
 0x46d   :  { %v2086_v53 = vmul.f32 %v2717_v18, %v3897_v23  ;;  %v2723_v23 = vld [vmem:[#allocation2 + $0x280] sm:$0xff] }
 0x46e   :  { %1592 = vbcast.lane.b32.xlu1 %v3782_v50, 336  ;;  %1919 = vbcast.lane.b32.xlu0 %v3809_v1, 320 }
 0x470   :  { %v3903_v6 = vpop.permute.xlu1 %1761  ;;  %v3905_v8 = vpop.permute.xlu0 %1698 }
 0x472   :  { %1789 = vbcast.lane.b32.xlu1 %v3795_v44, 328  ;;  %1726 = vbcast.lane.b32.xlu0 %v3788_v9, 336 }
 0x474   :  { %v3909_v43 = vpop.permute.xlu1 %1891  ;;  %v1955_v36 = vpop.permute.xlu0 %1954 }
 0x475   :  { %v2179_v40 = vmul.f32 %v2711_v60, %v1955_v36  ;;  %v2131_v36 = vmul.f32 %v2716_v54, %v3879_v26  ;;  %v2722_v26 = vld [vmem:[#allocation2 + $0x20] sm:$0xff]  ;;  %v2730_v54 = vld [vmem:[#allocation2 + $0x198] sm:$0xff] }
 0x476   :  { %2049 = vbcast.lane.b32.xlu1 %v3825_v21, 312  ;;  %1986 = vbcast.lane.b32.xlu0 %v3816_v56, 320 }
 0x478   :  { %v3913_v34 = vpop.permute.xlu1 %1828  ;;  %v3915_v0 = vpop.permute.xlu0 %1568 }
 0x479   :  { %v2087_v37 = vmul.f32 %v2722_v26, %v3915_v0  ;;  %v2736_v26 = vld [vmem:[#allocation2 + $0x200] sm:$0xff] }
 0x47a   :  { %1856 = vbcast.lane.b32.xlu1 %v3802_v55, 328  ;;  %1663 = vbcast.lane.b32.xlu0 %v3786_v42, 344 }
 0x47c   :  { %v1959_v20 = vpop.permute.xlu1 %1958  ;;  %v3919_v29 = vpop.permute.xlu0 %1765 }
 0x47d   :  { %v2180_v27 = vmul.f32 %v2708_v32, %v1959_v20  ;;  %v2714_v20 = vld [vmem:[#allocation2 + $0x110] sm:$0xff]  ;;  %v2719_v32 = vld [vmem:[#allocation2 + $0xa8] sm:$0xff] }
 0x47e   :  { %1596 = vbcast.lane.b32.xlu1 %v3782_v50, 344  ;;  %1923 = vbcast.lane.b32.xlu0 %v3809_v1, 328  ;;  %v2117_v51 = vmul.f32 %v2714_v20, %v3883_v12  ;;  %v2718_v12 = vld [vmem:[#allocation2 + $0x288] sm:$0xff] }
 0x47f   :  { %v2337_v7 = vadd.f32 %v2180_v27, %v2179_v40  ;;  %v2164_v30 = vmul.f32 %v2718_v12, %v3909_v43  ;;  %v2720_v27 = vld [vmem:[#allocation2 + $0x318] sm:$0xff]  ;;  %v2213_v40 = vadd.f32 %v2212_v5, %v2086_v53  ;;  %v2274_v5 = vadd.f32 %v2132_v17, %v2131_v36  ;;  %v2732_v12 = vld [vmem:[#allocation2 + $0x1a0] sm:$0xff] }
 0x480   :  { %v1636_v13 = vpop.permute.xlu1 %1635  ;;  %v3923_v11 = vpop.permute.xlu0 %2021 }
 0x481   :  { %v2103_v2 = vmul.f32 %v2715_v16, %v1636_v13  ;;  %v2254_v13 = vadd.f32 %v2253_v10, %v2117_v51  ;;  %v2729_v16 = vld [vmem:[#allocation2 + $0xb0] sm:$0xff]  ;;  %v2214_v10 = vadd.f32 %v2213_v40, %v2087_v37 }
 0x482   :  { %1793 = vbcast.lane.b32.xlu1 %v3795_v44, 336  ;;  %1730 = vbcast.lane.b32.xlu0 %v3788_v9, 344 }
 0x484   :  { %v3927_v15 = vpop.permute.xlu1 %1895  ;;  %v3929_v39 = vpop.permute.xlu0 %1702 }
 0x486   :  { %2053 = vbcast.lane.b32.xlu1 %v3825_v21, 320  ;;  %1990 = vbcast.lane.b32.xlu0 %v3816_v56, 328 }
 0x488   :  { %v3933_v63 = vpop.permute.xlu1 %2025  ;;  %v1963_v47 = vpop.permute.xlu0 %1962 }
 0x489   :  { %v2181_v4 = vmul.f32 %v2712_v58, %v1963_v47  ;;  %v2234_v47 = vadd.f32 %v2233_v49, %v2102_v52  ;;  %v2163_v52 = vmul.f32 %v2723_v23, %v3899_v33  ;;  %v2725_v58 = vld [vmem:[#allocation2 + $0x190] sm:$0xff] }
 0x48a   :  { %1860 = vbcast.lane.b32.xlu1 %v3802_v55, 336  ;;  %1667 = vbcast.lane.b32.xlu0 %v3786_v42, 352  ;;  %v2133_v19 = vmul.f32 %v2725_v58, %v3903_v6  ;;  %v2134_v6 = vmul.f32 %v2730_v54, %v3919_v29  ;;  %v2733_v29 = vld [vmem:[#allocation2 + $0x128] sm:$0xff]  ;;  %v2740_v58 = vld [vmem:[#allocation2 + $0x380] sm:$0xff] }
 0x48b   :  { %v2338_v3 = vadd.f32 %v2337_v7, %v2181_v4  ;;  %v2235_v43 = vadd.f32 %v2234_v47, %v2103_v2  ;;  %v2726_v4 = vld [vmem:[#allocation2 + $0x118] sm:$0xff]  ;;  %v2316_v33 = vadd.f32 %v2164_v30, %v2163_v52 }
 0x48c   :  { %v3937_v45 = vpop.permute.xlu1 %1832  ;;  %v1640_v62 = vpop.permute.xlu0 %1639  ;;  %v2118_v0 = vmul.f32 %v2726_v4, %v3905_v8  ;;  %v2728_v7 = vld [vmem:[#allocation2 + $0x298] sm:$0xff]  ;;  %v2275_v53 = vadd.f32 %v2274_v5, %v2133_v19 }
 0x48d   :  { %v2104_v14 = vmul.f32 %v2719_v32, %v1640_v62  ;;  %v2165_v62 = vmul.f32 %v2724_v48, %v3927_v15  ;;  %v2738_v48 = vld [vmem:[#allocation2 + $0x208] sm:$0xff] }
 0x48e   :  { %1600 = vbcast.lane.b32.xlu1 %v3782_v50, 352  ;;  %1927 = vbcast.lane.b32.xlu0 %v3809_v1, 336  ;;  %v2276_v37 = vadd.f32 %v2275_v53, %v2134_v6  ;;  %v2747_v53 = vld [vmem:[#allocation2 + $0x320] sm:$0xff] }
 0x48f   :  { %v2236_v51 = vadd.f32 %v2235_v43, %v2104_v14  ;;  %v2317_v8 = vadd.f32 %v2316_v33, %v2165_v62  ;;  %v2739_v62 = vld [vmem:[#allocation2 + $0x210] sm:$0xff]  ;;  %v2742_v33 = vld [vmem:[#allocation2 + $0x1a8] sm:$0xff] }
 0x490   :  { %v3941_v35 = vpop.permute.xlu1 %1572  ;;  %v3943_v61 = vpop.permute.xlu0 %1899  ;;  %v2149_v40 = vmul.f32 %v2739_v62, %v3913_v34  ;;  %v2744_v34 = vld [vmem:[#allocation2 + $0x218] sm:$0xff] }
 0x491   :  { %v2088_v41 = vmul.f32 %v2727_v38, %v3941_v35  ;;  %v2166_v15 = vmul.f32 %v2728_v7, %v3943_v61  ;;  %v2731_v35 = vld [vmem:[#allocation2 + $0x120] sm:$0xff] }
 0x492   :  { %1797 = vbcast.lane.b32.xlu1 %v3795_v44, 344  ;;  %1734 = vbcast.lane.b32.xlu0 %v3788_v9, 352  ;;  %v2119_v47 = vmul.f32 %v2731_v35, %v3929_v39  ;;  %v2147_v39 = vmul.f32 %v2736_v26, %v3893_v28  ;;  %v2195_v28 = vmul.f32 %v2740_v58, %v3923_v11  ;;  %v2746_v35 = vld [vmem:[#allocation2 + $0x398] sm:$0xff] }
 0x493   :  { %v2215_v61 = vadd.f32 %v2214_v10, %v2088_v41  ;;  %v2318_v32 = vadd.f32 %v2317_v8, %v2166_v15  ;;  %v2741_v41 = vld [vmem:[#allocation2 + $0x390] sm:$0xff]  ;;  %v2150_v11 = vmul.f32 %v2744_v34, %v3937_v45  ;;  %v2750_v26 = vld [vmem:[#allocation2 + $0x38] sm:$0xff] }
 0x494   :  { %v3952_v25 = vpop.permute.xlu1 %1769  ;;  %v3954_v59 = vpop.permute.xlu0 %1706 }
 0x495   :  { %v2135_v36 = vmul.f32 %v2732_v12, %v3952_v25  ;;  %v2120_v14 = vmul.f32 %v2733_v29, %v3954_v59  ;;  %v2737_v25 = vld [vmem:[#allocation2 + $0x388] sm:$0xff]  ;;  %v2148_v59 = vmul.f32 %v2738_v48, %v3889_v22 }
 0x496   :  { %2057 = vbcast.lane.b32.xlu1 %v3825_v21, 328  ;;  %1994 = vbcast.lane.b32.xlu0 %v3816_v56, 336  ;;  %v2196_v23 = vmul.f32 %v2737_v25, %v3933_v63 }
 0x497   :  { %v2277_v19 = vadd.f32 %v2276_v37, %v2135_v36  ;;  %v2295_v15 = vadd.f32 %v2148_v59, %v2147_v39  ;;  %v2751_v37 = vld [vmem:[#allocation2 + $0x2a8] sm:$0xff]  ;;  %v2752_v59 = vld [vmem:[#allocation2 + $0x1b0] sm:$0xff] }
 0x498   :  { %v3962_v31 = vpop.permute.xlu1 %2029  ;;  %v1967_v57 = vpop.permute.xlu0 %1966  ;;  %v2358_v22 = vadd.f32 %v2196_v23, %v2195_v28 }
 0x499   :  { %v2182_v24 = vmul.f32 %v2720_v27, %v1967_v57  ;;  %v2255_v57 = vadd.f32 %v2254_v13, %v2118_v0  ;;  %v2734_v27 = vld [vmem:[#allocation2 + $0x30] sm:$0xff]  ;;  %v2296_v5 = vadd.f32 %v2295_v15, %v2149_v40  ;;  %v2753_v40 = vld [vmem:[#allocation2 + $0x138] sm:$0xff]  ;;  %v2757_v15 = vld [vmem:[#allocation2 + $0xc0] sm:$0xff] }
 0x49a   :  { %1864 = vbcast.lane.b32.xlu1 %v3802_v55, 344  ;;  %1671 = vbcast.lane.b32.xlu0 %v3786_v42, 360 }
 0x49b   :  { %v3971_v60 = vadd.f32 %v2338_v3, %v2182_v24  ;;  %v2256_v13 = vadd.f32 %v2255_v57, %v2119_v47 }
 0x49c   :  { %v3976_v49 = vpop.permute.xlu1 %1836  ;;  %v1644_v20 = vpop.permute.xlu0 %1643 }
 0x49d   :  { %v2105_v2 = vmul.f32 %v2729_v16, %v1644_v20  ;;  %v2257_v38 = vadd.f32 %v2256_v13, %v2120_v14  ;;  %v2197_v20 = vmul.f32 %v2741_v41, %v3962_v31  ;;  %v2745_v31 = vld [vmem:[#allocation2 + $0x220] sm:$0xff]  ;;  %v2749_v14 = vld [vmem:[#allocation2 + $0xb8] sm:$0xff]  ;;  %v2755_v41 = vld [vmem:[#allocation2 + $0x328] sm:$0xff] }
 0x49e   :  { %1604 = vbcast.lane.b32.xlu1 %v3782_v50, 360  ;;  %1931 = vbcast.lane.b32.xlu0 %v3809_v1, 344  ;;  %v2151_v8 = vmul.f32 %v2745_v31, %v3976_v49 }
 0x49f   :  { %v3983_v18 = vadd.f32 %v2236_v51, %v2105_v2  ;;  %v2743_v51 = vld [vmem:[#allocation2 + $0x130] sm:$0xff]  ;;  %v2359_v6 = vadd.f32 %v2358_v22, %v2197_v20 }
 0x4a0   :  { %v1577_v30 = vpop.permute.xlu1 %1576  ;;  %v1904_v3 = vpop.permute.xlu0 %1903 }
 0x4a1   :  { %v2089_v24 = vmul.f32 %v2734_v27, %v1577_v30  ;;  %v2167_v17 = vmul.f32 %v2735_v46, %v1904_v3 }
 0x4a2   :  { %1801 = vbcast.lane.b32.xlu1 %v3795_v44, 352  ;;  %1738 = vbcast.lane.b32.xlu0 %v3788_v9, 360 }
 0x4a3   :  { %v2216_v52 = vadd.f32 %v2215_v61, %v2089_v24  ;;  %v2319_v43 = vadd.f32 %v2318_v32, %v2167_v17  ;;  %v2297_v61 = vadd.f32 %v2296_v5, %v2150_v11  ;;  %v2748_v32 = vld [vmem:[#allocation2 + $0x228] sm:$0xff]  ;;  %v2758_v5 = vld [vmem:[#allocation2 + $0x40] sm:$0xff] }
 0x4a4   :  { %v1774_v4 = vpop.permute.xlu1 %1773  ;;  %v1711_v0 = vpop.permute.xlu0 %1710 }
 0x4a5   :  { %v2136_v63 = vmul.f32 %v2742_v33, %v1774_v4  ;;  %v2121_v7 = vmul.f32 %v2743_v51, %v1711_v0  ;;  %v2298_v3 = vadd.f32 %v2297_v61, %v2151_v8  ;;  %v2754_v0 = vld [vmem:[#allocation2 + $0x3a0] sm:$0xff]  ;;  %v2756_v51 = vld [vmem:[#allocation2 + $0x230] sm:$0xff] }
 0x4a6   :  { %2061 = vbcast.lane.b32.xlu1 %v3825_v21, 336  ;;  %1998 = vbcast.lane.b32.xlu0 %v3816_v56, 344 }
 0x4a7   :  { %v2278_v16 = vadd.f32 %v2277_v19, %v2136_v63  ;;  %v2258_v2 = vadd.f32 %v2257_v38, %v2121_v7 }
 0x4a8   :  { %v2034_v10 = vpop.permute.xlu1 %2033  ;;  %v1971_v54 = vpop.permute.xlu0 %1970 }
 0x4a9   :  { %v2198_v47 = vmul.f32 %v2746_v35, %v2034_v10  ;;  %v2183_v57 = vmul.f32 %v2747_v53, %v1971_v54  ;;  %v2759_v54 = vld [vmem:[#allocation2 + $0x2b0] sm:$0xff]  ;;  %v2761_v53 = vld [vmem:[#allocation2 + $0x140] sm:$0xff] }
 0x4aa   :  { %1868 = vbcast.lane.b32.xlu1 %v3802_v55, 352  ;;  %1675 = vbcast.lane.b32.xlu0 %v3786_v42, 368 }
 0x4ab   :  { %v2360_v12 = vadd.f32 %v2359_v6, %v2198_v47  ;;  %v2340_v45 = vadd.f32 %v3971_v60, %v2183_v57  ;;  %v2760_v47 = vld [vmem:[#allocation2 + $0x1b8] sm:$0xff] }
 0x4ac   :  { %v1841_v36 = vpop.permute.xlu1 %1840  ;;  %v1648_v30 = vpop.permute.xlu0 %1647 }
 0x4ad   :  { %v2152_v29 = vmul.f32 %v2748_v32, %v1841_v36  ;;  %v2106_v27 = vmul.f32 %v2749_v14, %v1648_v30  ;;  %v2762_v30 = vld [vmem:[#allocation2 + $0x3a8] sm:$0xff]  ;;  %v2763_v32 = vld [vmem:[#allocation2 + $0x330] sm:$0xff] }
 0x4ae   :  { %1608 = vbcast.lane.b32.xlu1 %v3782_v50, 368  ;;  %1935 = vbcast.lane.b32.xlu0 %v3809_v1, 352 }
 0x4af   :  { %v2299_v49 = vadd.f32 %v2298_v3, %v2152_v29  ;;  %v2238_v24 = vadd.f32 %v3983_v18, %v2106_v27 }
 0x4b0   :  { %v1581_v46 = vpop.permute.xlu1 %1580  ;;  %v1908_v17 = vpop.permute.xlu0 %1907 }
 0x4b1   :  { %v2090_v39 = vmul.f32 %v2750_v26, %v1581_v46  ;;  %v2168_v60 = vmul.f32 %v2751_v37, %v1908_v17  ;;  %v2765_v17 = vld [vmem:[#allocation2 + $0xc8] sm:$0xff] }
 0x4b2   :  { %1805 = vbcast.lane.b32.xlu1 %v3795_v44, 360  ;;  %1742 = vbcast.lane.b32.xlu0 %v3788_v9, 368 }
 0x4b3   :  { %v2217_v13 = vadd.f32 %v2216_v52, %v2090_v39  ;;  %v2320_v25 = vadd.f32 %v2319_v43, %v2168_v60  ;;  %v2411_v60 = vld [vmem:[%s4254_s4 + $0x80] sm:$0xff] }
 0x4b4   :  { %v1778_v23 = vpop.permute.xlu1 %1777  ;;  %v1715_v48 = vpop.permute.xlu0 %1714 }
 0x4b5   :  { %v2137_v62 = vmul.f32 %v2752_v59, %v1778_v23  ;;  %v2122_v58 = vmul.f32 %v2753_v40, %v1715_v48  ;;  %v2766_v59 = vld [vmem:[#allocation2 + $0x48] sm:$0xff]  ;;  %v2767_v40 = vld [vmem:[#allocation2 + $0x2b8] sm:$0xff] }
 0x4b6   :  { %2065 = vbcast.lane.b32.xlu1 %v3825_v21, 344  ;;  %2002 = vbcast.lane.b32.xlu0 %v3816_v56, 352 }
 0x4b7   :  { %v2279_v18 = vadd.f32 %v2278_v16, %v2137_v62  ;;  %v2259_v28 = vadd.f32 %v2258_v2, %v2122_v58 }
 0x4b8   :  { %v2038_v19 = vpop.permute.xlu1 %2037  ;;  %v1975_v4 = vpop.permute.xlu0 %1974 }
 0x4b9   :  { %v2199_v38 = vmul.f32 %v2754_v0, %v2038_v19  ;;  %v2184_v20 = vmul.f32 %v2755_v41, %v1975_v4  ;;  %v2413_v4 = vld [vmem:[%s4254_s4 + $0x90] sm:$0xff]  ;;  %v2414_v0 = vld [vmem:[%s4254_s4 + $0x98] sm:$0xff] }
 0x4ba   :  { %1872 = vbcast.lane.b32.xlu1 %v3802_v55, 360  ;;  %1679 = vbcast.lane.b32.xlu0 %v3786_v42, 376 }
 0x4bb   :  { %v2361_v52 = vadd.f32 %v2360_v12, %v2199_v38  ;;  %v2341_v43 = vadd.f32 %v2340_v45, %v2184_v20  ;;  %v2397_v38 = vld [vmem:[%s4254_s4 + $0x10] sm:$0xff] }
 0x4bc   :  { %v1845_v33 = vpop.permute.xlu1 %1844  ;;  %v1652_v63 = vpop.permute.xlu0 %1651 }
 0x4bd   :  { %v2153_v7 = vmul.f32 %v2756_v51, %v1845_v33  ;;  %v2107_v22 = vmul.f32 %v2757_v15, %v1652_v63  ;;  %v2769_v63 = vld [vmem:[#allocation2 + $0x148] sm:$0xff] }
 0x4be   :  { %1612 = vbcast.lane.b32.xlu1 %v3782_v50, 376  ;;  %1939 = vbcast.lane.b32.xlu0 %v3809_v1, 360 }
 0x4bf   :  { %v2300_v34 = vadd.f32 %v2299_v49, %v2153_v7  ;;  %v2239_v11 = vadd.f32 %v2238_v24, %v2107_v22  ;;  %v2764_v24 = vld [vmem:[#allocation2 + $0x238] sm:$0xff] }
 0x4c0   :  { %v1585_v16 = vpop.permute.xlu1 %1584  ;;  %v1912_v2 = vpop.permute.xlu0 %1911 }
 0x4c1   :  { %v2091_v10 = vmul.f32 %v2758_v5, %v1585_v16  ;;  %v2169_v42 = vmul.f32 %v2759_v54, %v1912_v2  ;;  %v2399_v16 = vld [vmem:[%s4254_s4 + $0x20] sm:$0xff]  ;;  %v2417_v54 = vld [vmem:[%s4254_s4 + $0xb0] sm:$0xff] }
 0x4c2   :  { %1809 = vbcast.lane.b32.xlu1 %v3795_v44, 368  ;;  %1746 = vbcast.lane.b32.xlu0 %v3788_v9, 376 }
 0x4c3   :  { %v2218_v6 = vadd.f32 %v2217_v13, %v2091_v10  ;;  %v2321_v31 = vadd.f32 %v2320_v25, %v2169_v42  ;;  %v2412_v13 = vld [vmem:[%s4254_s4 + $0x88] sm:$0xff]  ;;  %v2395_v25 = vld [vmem:[%s4254_s4] sm:$0xff]  ;;  %v2418_v42 = vld [vmem:[%s4254_s4 + $0xb8] sm:$0xff] }
 0x4c4   :  { %v1782_v8 = vpop.permute.xlu1 %1781  ;;  %v1719_v35 = vpop.permute.xlu0 %1718  ;;  %v2654_v48 = vpack.c.bf16 %v2412_v13, %v2411_v60  ;;  %v2400_v10 = vld [vmem:[%s4254_s4 + $0x28] sm:$0xff] }
 0x4c5   :  { %v2138_v50 = vmul.f32 %v2760_v47, %v1782_v8  ;;  %v2123_v57 = vmul.f32 %v2761_v53, %v1719_v35  ;;  %v2771_v8 = vld [vmem:[#allocation2 + $0x338] sm:$0xff]  ;;  %v2664_v47 = vpack.c.bf16 %v2400_v10, %v2399_v16  ;;  %v2401_v53 = vld [vmem:[%s4254_s4 + $0x30] sm:$0xff]  ;;  %v2779_v10 = vld [vmem:[#allocation2 + $0x340] sm:$0xff] }
 0x4c6   :  { %2069 = vbcast.lane.b32.xlu1 %v3825_v21, 352  ;;  %2006 = vbcast.lane.b32.xlu0 %v3816_v56, 360 }
 0x4c7   :  { %v2280_v61 = vadd.f32 %v2279_v18, %v2138_v50  ;;  %v2260_v12 = vadd.f32 %v2259_v28, %v2123_v57  ;;  %2655 = vmatprep.subr.bf16.mxu1 %v2654_v48  ;;  %v2666_v50 = vpack.c.bf16 %v2418_v42, %v2417_v54  ;;  %v2402_v57 = vld [vmem:[%s4254_s4 + $0x38] sm:$0xff]  ;;  %v2774_v48 = vld [vmem:[#allocation2 + $0x50] sm:$0xff] }
 0x4c8   :  { %v2042_v45 = vpop.permute.xlu1 %2041  ;;  %v1979_v36 = vpop.permute.xlu0 %1978 }
 0x4c9   :  { %v2200_v3 = vmul.f32 %v2762_v30, %v2042_v45  ;;  %v2185_v9 = vmul.f32 %v2763_v32, %v1979_v36  ;;  %v2419_v45 = vld [vmem:[%s4254_s4 + $0xc0] sm:$0xff]  ;;  %v2420_v36 = vld [vmem:[%s4254_s4 + $0xc8] sm:$0xff]  ;;  %v2668_v32 = vpack.c.bf16 %v2402_v57, %v2401_v53  ;;  %v2781_v57 = vld [vmem:[#allocation2 + $0xd8] sm:$0xff] }
 0x4ca   :  { %1876 = vbcast.lane.b32.xlu1 %v3802_v55, 368  ;;  %1943 = vbcast.lane.b32.xlu0 %v3809_v1, 368 }
 0x4cb   :  { %v4019_v29 = vadd.f32 %v2361_v52, %v2200_v3  ;;  %v4021_v14 = vadd.f32 %v2341_v43, %v2185_v9  ;;  %v2398_v52 = vld [vmem:[%s4254_s4 + $0x18] sm:$0xff]  ;;  %v2768_v43 = vld [vmem:[#allocation2 + $0x1c0] sm:$0xff] }
 0x4cc   :  { %v1849_v27 = vpop.permute.xlu1 %1848  ;;  %v1656_v49 = vpop.permute.xlu0 %1655  ;;  %v2660_v7 = vpack.c.bf16 %v2398_v52, %v2397_v38  ;;  %v2772_v9 = vld [vmem:[#allocation2 + $0x240] sm:$0xff]  ;;  %v2777_v52 = vld [vmem:[#allocation2 + $0x150] sm:$0xff] }
 0x4cd   :  { %v2154_v46 = vmul.f32 %v2764_v24, %v1849_v27  ;;  %v2108_v26 = vmul.f32 %v2765_v17, %v1656_v49  ;;  %v2773_v49 = vld [vmem:[#allocation2 + $0xd0] sm:$0xff]  ;;  %v2670_v24 = vpack.c.bf16 %v2420_v36, %v2419_v45 }
 0x4ce   :  { %1813 = vbcast.lane.b32.xlu1 %v3795_v44, 376  ;;  %1880 = vbcast.lane.b32.xlu0 %v3802_v55, 376  ;;  %v2396_v55 = vld [vmem:[%s4254_s4 + $0x8] sm:$0xff]  ;;  %v2421_v17 = vld [vmem:[%s4254_s4 + $0xd0] sm:$0xff] }
 0x4cf   :  { %v4025_v39 = vadd.f32 %v2300_v34, %v2154_v46  ;;  %v4027_v37 = vadd.f32 %v2239_v11, %v2108_v26  ;;  %v2656_v18 = vpack.c.bf16 %v2396_v55, %v2395_v25  ;;  %v2415_v34 = vld [vmem:[%s4254_s4 + $0xa0] sm:$0xff]  ;;  %v2416_v11 = vld [vmem:[%s4254_s4 + $0xa8] sm:$0xff]  ;;  %v2422_v26 = vld [vmem:[%s4254_s4 + $0xd8] sm:$0xff] }
 0x4d0   :  { %v1589_v23 = vpop.permute.xlu1 %1588  ;;  %v1916_v44 = vpop.permute.xlu0 %1915  ;;  %v2404_v46 = vld [vmem:[%s4254_s4 + $0x48] sm:$0xff] }
 0x4d1   :  { %v2092_v62 = vmul.f32 %v2766_v59, %v1589_v23  ;;  %v2170_v58 = vmul.f32 %v2767_v40, %v1916_v44  ;;  %2657 = vmatpush3.bf16.msra.mxu1 %v2656_v18  ;;  %v2775_v59 = vld [vmem:[#allocation2 + $0x2c0] sm:$0xff]  ;;  %v2405_v40 = vld [vmem:[%s4254_s4 + $0x50] sm:$0xff] }
 0x4d2   :  { %2073 = vbcast.lane.b32.xlu1 %v3825_v21, 360  ;;  %1947 = vbcast.lane.b32.xlu0 %v3809_v1, 376  ;;  %v2658_v1 = vpack.c.bf16 %v2414_v0, %v2413_v4 }
 0x4d3   :  { %v4043_v28 = vadd.f32 %v2218_v6, %v2092_v62  ;;  %v4045_v19 = vadd.f32 %v2321_v31, %v2170_v58  ;;  %v2770_v6 = vld [vmem:[#allocation2 + $0x3b0] sm:$0xff]  ;;  %v2674_v62 = vpack.c.bf16 %v2422_v26, %v2421_v17  ;;  %v2424_v58 = vld [vmem:[%s4254_s4 + $0xe8] sm:$0xff]  ;;  %v2785_v26 = vld [vmem:[#allocation2 + $0x158] sm:$0xff] }
 0x4d4   :  { %v1786_v41 = vpop.permute.xlu1 %1785  ;;  %v1723_v20 = vpop.permute.xlu0 %1722  ;;  %2659 = vmatprep.subr.bf16.mxu1 %v2658_v1 }
 0x4d5   :  { %v2139_v33 = vmul.f32 %v2768_v43, %v1786_v41  ;;  %v2124_v51 = vmul.f32 %v2769_v63, %v1723_v20  ;;  %2661 = vmatpush3.bf16.msra.mxu1 %v2660_v7  ;;  %v2776_v20 = vld [vmem:[#allocation2 + $0x1c8] sm:$0xff]  ;;  %v2407_v63 = vld [vmem:[%s4254_s4 + $0x60] sm:$0xff] }
 0x4d6   :  { %2010 = vbcast.lane.b32.xlu1 %v3816_v56, 368  ;;  %2014 = vbcast.lane.b32.xlu0 %v3816_v56, 376  ;;  %v2662_v56 = vpack.c.bf16 %v2416_v11, %v2415_v34 }
 0x4d7   :  { %v4061_v15 = vadd.f32 %v2280_v61, %v2139_v33  ;;  %v4063_v22 = vadd.f32 %v2260_v12, %v2124_v51  ;;  %v2426_v51 = vld [vmem:[%s4254_s4 + $0xf8] sm:$0xff] }
 0x4d8   :  { %v2046_v2 = vpop.permute.xlu1 %2045  ;;  %v1983_v5 = vpop.permute.xlu0 %1982  ;;  %2663 = vmatprep.subr.bf16.mxu1 %v2662_v56 }
 0x4d9   :  { %v2201_v31 = vmul.f32 %v2770_v6, %v2046_v2  ;;  %v2186_v35 = vmul.f32 %v2771_v8, %v1983_v5  ;;  %2665 = vmatpush3.bf16.msra.mxu1 %v2664_v47  ;;  %v2778_v5 = vld [vmem:[#allocation2 + $0x3b8] sm:$0xff]  ;;  %v2409_v6 = vld [vmem:[%s4254_s4 + $0x70] sm:$0xff] }
 0x4da   :  { %2077 = vbcast.lane.b32.xlu1 %v3825_v21, 368  ;;  %2667 = vmatprep.subr.bf16.mxu1 %v2666_v50  ;;  %v2780_v50 = vld [vmem:[#allocation2 + $0x248] sm:$0xff] }
 0x4db   :  { %v4091_v61 = vadd.f32 %v4019_v29, %v2201_v31  ;;  %v4094_v12 = vadd.f32 %v4021_v14, %v2186_v35  ;;  %v2403_v14 = vld [vmem:[%s4254_s4 + $0x40] sm:$0xff] }
 0x4dc   :  { %v1853_v30 = vpop.permute.xlu1 %1852  ;;  %v1660_v3 = vpop.permute.xlu0 %1659  ;;  %v2672_v44 = vpack.c.bf16 %v2404_v46, %v2403_v14  ;;  %v2784_v46 = vld [vmem:[#allocation2 + $0x1d0] sm:$0xff] }
 0x4dd   :  { %v2155_v27 = vmul.f32 %v2772_v9, %v1853_v30  ;;  %v2109_v29 = vmul.f32 %v2773_v49, %v1660_v3  ;;  %2669 = vmatpush3.bf16.msra.mxu1 %v2668_v32  ;;  %v2782_v9 = vld [vmem:[#allocation2 + $0x58] sm:$0xff]  ;;  %v2783_v49 = vld [vmem:[#allocation2 + $0x2c8] sm:$0xff] }
 0x4de   :  { %2081 = vbcast.lane.b32.xlu1 %v3825_v21, 376  ;;  %2671 = vmatprep.subr.bf16.mxu1 %v2670_v24 }
 0x4df   :  { %v2302_v60 = vadd.f32 %v4025_v39, %v2155_v27  ;;  %v2241_v13 = vadd.f32 %v4027_v37, %v2109_v29  ;;  %v2406_v39 = vld [vmem:[%s4254_s4 + $0x58] sm:$0xff]  ;;  %v2423_v37 = vld [vmem:[%s4254_s4 + $0xe0] sm:$0xff] }
 0x4e0   :  { %v1593_v25 = vpop.permute.xlu1 %1592  ;;  %v1920_v23 = vpop.permute.xlu0 %1919  ;;  %v2676_v41 = vpack.c.bf16 %v2406_v39, %v2405_v40  ;;  %v2678_v33 = vpack.c.bf16 %v2424_v58, %v2423_v37  ;;  %v2788_v58 = vld [vmem:[#allocation2 + $0x250] sm:$0xff] }
 0x4e1   :  { %v2093_v55 = vmul.f32 %v2774_v48, %v1593_v25  ;;  %v2171_v21 = vmul.f32 %v2775_v59, %v1920_v23  ;;  %2673 = vmatpush3.bf16.msra.mxu1 %v2672_v44  ;;  %v2786_v48 = vld [vmem:[#allocation2 + $0x3c0] sm:$0xff]  ;;  %v2787_v59 = vld [vmem:[#allocation2 + $0x348] sm:$0xff] }
 0x4e2   :  { %2675 = vmatprep.subr.bf16.mxu1 %v2674_v62 }
 0x4e3   :  { %v2220_v18 = vadd.f32 %v4043_v28, %v2093_v55  ;;  %v2323_v4 = vadd.f32 %v4045_v19, %v2171_v21  ;;  %v2408_v28 = vld [vmem:[%s4254_s4 + $0x68] sm:$0xff]  ;;  %v2425_v19 = vld [vmem:[%s4254_s4 + $0xf0] sm:$0xff] }
 0x4e4   :  { %v1790_v0 = vpop.permute.xlu1 %1789  ;;  %v1727_v38 = vpop.permute.xlu0 %1726  ;;  %v2680_v2 = vpack.c.bf16 %v2408_v28, %v2407_v63  ;;  %v2682_v42 = vpack.c.bf16 %v2426_v51, %v2425_v19  ;;  %v2791_v19 = vld [vmem:[#allocation2 + $0x1d8] sm:$0xff] }
 0x4e5   :  { %v2140_v1 = vmul.f32 %v2776_v20, %v1790_v0  ;;  %v2125_v43 = vmul.f32 %v2777_v52, %v1727_v38  ;;  %2677 = vmatpush3.bf16.msra.mxu1 %v2676_v41  ;;  %v2790_v52 = vld [vmem:[#allocation2 + $0x60] sm:$0xff] }
 0x4e6   :  { %2679 = vmatprep.subr.bf16.mxu1 %v2678_v33 }
 0x4e7   :  { %v2282_v7 = vadd.f32 %v4061_v15, %v2140_v1  ;;  %v2262_v34 = vadd.f32 %v4063_v22, %v2125_v43  ;;  %v2410_v15 = vld [vmem:[%s4254_s4 + $0x78] sm:$0xff]  ;;  %s2931_s4 = smov [#allocation6]  }
 0x4e8   :  { %v2050_v11 = vpop.permute.xlu1 %2049  ;;  %v1987_v16 = vpop.permute.xlu0 %1986  ;;  %v2684_v47 = vpack.c.bf16 %v2410_v15, %v2409_v6  ;;  %s2517_s10 = sshll.u32 %s2931_s4, 4  ;;  %s2518_s10 = int_to_ptr.vmem [resolvable:$true] %s2517_s10 }
 0x4e9   :  { %v2202_v56 = vmul.f32 %v2778_v5, %v2050_v11  ;;  %v2187_v54 = vmul.f32 %v2779_v10, %v1987_v16  ;;  %2681 = vmatpush3.bf16.msra.mxu1 %v2680_v2  ;;  %s2852_s0 = scalar_lea.vmem %s2518_s10, 128  ;;  %p2857_p9 = scmp.lt.s32.totalorder %s2518_s10, %s2518_s10 }
 0x4ea   :  { %2683 = vmatprep.subr.bf16.mxu1 %v2682_v42  ;;  %p2853_p8 = scmp.ne.s32.totalorder %s2518_s10, %s2852_s0  ;;  %p2858_p10 = scmp.lt.s32.totalorder %s2852_s0, %s2852_s0 }
 0x4eb   :  { %v2364_v22 = vadd.f32 %v4091_v61, %v2202_v56  ;;  %v2344_v31 = vadd.f32 %v4094_v12, %v2187_v54 }
 0x4ec   :  { %v1857_v8 = vpop.permute.xlu1 %1856  ;;  %v1664_v35 = vpop.permute.xlu0 %1663  ;;  %p2859_p11 = por %p2858_p10, %p2857_p9 }
 0x4ed   :  { %v2156_v53 = vmul.f32 %v2780_v50, %v1857_v8  ;;  %v2110_v45 = vmul.f32 %v2781_v57, %v1664_v35  ;;  %2685 = vmatpush3.bf16.msra.mxu1 %v2684_v47  ;;  %v2792_v50 = vld [vmem:[#allocation2 + $0xe8] sm:$0xff] }
 0x4ee   :  { %p2860_p12 = pnand %p2859_p11, %p2853_p8 }
 0x4ef   :  { %v2303_v36 = vadd.f32 %v2302_v60, %v2156_v53  ;;  %v2242_v30 = vadd.f32 %v2241_v13, %v2110_v45 }
 0x4f0   :  { %v1597_v3 = vpop.permute.xlu1 %1596  ;;  %v1924_v32 = vpop.permute.xlu0 %1923 }
 0x4f1   :  { %v2094_v27 = vmul.f32 %v2782_v9, %v1597_v3  ;;  %v2172_v61 = vmul.f32 %v2783_v49, %v1924_v32  ;;  %v2794_v32 = vld [vmem:[#allocation2 + $0x68] sm:$0xff] }
 0x4f3   :  { %v2221_v29 = vadd.f32 %v2220_v18, %v2094_v27  ;;  %v4153_v12 = vadd.f32 %v2323_v4, %v2172_v61  ;;  %v2789_v4 = vld [vmem:[#allocation2 + $0xe0] sm:$0xff] }
 0x4f4   :  { %v1794_v24 = vpop.permute.xlu1 %1793  ;;  %v1731_v14 = vpop.permute.xlu0 %1730  ;;  %v2795_v27 = vld [vmem:[#allocation2 + $0x160] sm:$0xff] }
 0x4f5   :  { %v2141_v17 = vmul.f32 %v2784_v46, %v1794_v24  ;;  %v2126_v25 = vmul.f32 %v2785_v26, %v1731_v14  ;;  %v2796_v14 = vld [vmem:[#allocation2 + $0x70] sm:$0xff] }
 0x4f7   :  { %v2283_v23 = vadd.f32 %v2282_v7, %v2141_v17  ;;  %v4155_v44 = vadd.f32 %v2262_v34, %v2126_v25  ;;  %v2797_v17 = vld [vmem:[#allocation2 + $0xf8] sm:$0xff] }
 0x4f8   :  { %v2054_v60 = vpop.permute.xlu1 %2053  ;;  %v1991_v13 = vpop.permute.xlu0 %1990 }
 0x4f9   :  { %v2203_v55 = vmul.f32 %v2786_v48, %v2054_v60  ;;  %v2188_v21 = vmul.f32 %v2787_v59, %v1991_v13 }
 0x4fb   :  { %v4157_v62 = vadd.f32 %v2364_v22, %v2203_v55  ;;  %v4159_v40 = vadd.f32 %v2344_v31, %v2188_v21 }
 0x4fc   :  { %v1861_v39 = vpop.permute.xlu1 %1860  ;;  %v1668_v37 = vpop.permute.xlu0 %1667 }
 0x4fd   :  { %v2157_v18 = vmul.f32 %v2788_v58, %v1861_v39  ;;  %v2111_v0 = vmul.f32 %v2789_v4, %v1668_v37  ;;  %v2799_v39 = vld [vmem:[#allocation2 + $0x170] sm:$0xff] }
 0x4ff   :  { %v4161_v38 = vadd.f32 %v2303_v36, %v2157_v18  ;;  %v2243_v41 = vadd.f32 %v2242_v30, %v2111_v0  ;;  %v2793_v36 = vld [vmem:[#allocation2 + $0xf0] sm:$0xff]  ;;  %v2800_v18 = vld [vmem:[#allocation2 + $0x78] sm:$0xff] }
 0x500   :  { %v1601_v20 = vpop.permute.xlu1 %1600  ;;  %v4163_v1 = vpop.permute.xlu0 %1927 }
 0x501   :  { %v2095_v43 = vmul.f32 %v2790_v52, %v1601_v20 }
 0x503   :  { %v2222_v33 = vadd.f32 %v2221_v29, %v2095_v43 }
 0x504   :  { %v1798_v63 = vpop.permute.xlu1 %1797  ;;  %v1735_v28 = vpop.permute.xlu0 %1734 }
 0x505   :  { %v2142_v51 = vmul.f32 %v2791_v19, %v1798_v63  ;;  %v2127_v49 = vmul.f32 %v2795_v27, %v1735_v28  ;;  %v2801_v19 = vld [vmem:[#allocation2 + $0x178] sm:$0xff] }
 0x507   :  { %v4165_v7 = vadd.f32 %v2283_v23, %v2142_v51  ;;  %v2798_v23 = vld [vmem:[#allocation2 + $0x168] sm:$0xff]  ;;  %v2264_v48 = vadd.f32 %v4155_v44, %v2127_v49  ;;  %v2802_v44 = vld [vmem:[#allocation2 + $0x258] sm:$0xff] }
 0x508   :  { %v4167_v34 = vpop.permute.xlu1 %2057  ;;  %v4169_v11 = vpop.permute.xlu0 %1994 }
 0x50c   :  { %v1865_v16 = vpop.permute.xlu1 %1864  ;;  %v1672_v2 = vpop.permute.xlu0 %1671 }
 0x50d   :  { %v2112_v53 = vmul.f32 %v2792_v50, %v1672_v2  ;;  %v2158_v2 = vmul.f32 %v2802_v44, %v1865_v16  ;;  %v2804_v50 = vld [vmem:[#allocation2 + $0x1e0] sm:$0xff] }
 0x50f   :  { %v2244_v3 = vadd.f32 %v2243_v41, %v2112_v53  ;;  %v2305_v49 = vadd.f32 %v4161_v38, %v2158_v2 }
 0x510   :  { %v1605_v5 = vpop.permute.xlu1 %1604  ;;  %v4171_v56 = vpop.permute.xlu0 %1931 }
 0x511   :  { %v2096_v9 = vmul.f32 %v2794_v32, %v1605_v5  ;;  %v2803_v5 = vld [vmem:[#allocation2 + $0x2d0] sm:$0xff] }
 0x513   :  { %v2223_v25 = vadd.f32 %v2222_v33, %v2096_v9 }
 0x514   :  { %v1802_v10 = vpop.permute.xlu1 %1801  ;;  %v1739_v54 = vpop.permute.xlu0 %1738 }
 0x515   :  { %v2128_v60 = vmul.f32 %v2798_v23, %v1739_v54  ;;  %v2173_v54 = vmul.f32 %v2803_v5, %v4163_v1  ;;  %v2143_v53 = vmul.f32 %v2804_v50, %v1802_v10 }
 0x517   :  { %v2265_v0 = vadd.f32 %v2264_v48, %v2128_v60  ;;  %v2809_v60 = vld [vmem:[#allocation2 + $0x2e0] sm:$0xff]  ;;  %v2810_v48 = vld [vmem:[#allocation2 + $0x1f0] sm:$0xff] }
 0x518   :  { %v4173_v42 = vpop.permute.xlu1 %2061  ;;  %v4175_v6 = vpop.permute.xlu0 %1998 }
 0x51c   :  { %v1869_v15 = vpop.permute.xlu1 %1868  ;;  %v1676_v22 = vpop.permute.xlu0 %1675 }
 0x51d   :  { %v2113_v30 = vmul.f32 %v2793_v36, %v1676_v22  ;;  %v2805_v36 = vld [vmem:[#allocation2 + $0x260] sm:$0xff] }
 0x51f   :  { %v2245_v24 = vadd.f32 %v2244_v3, %v2113_v30  ;;  %v2159_v30 = vmul.f32 %v2805_v36, %v1869_v15 }
 0x520   :  { %v1609_v31 = vpop.permute.xlu1 %1608  ;;  %v4177_v8 = vpop.permute.xlu0 %1935 }
 0x521   :  { %v2097_v46 = vmul.f32 %v2796_v14, %v1609_v31  ;;  %v2808_v14 = vld [vmem:[#allocation2 + $0x268] sm:$0xff]  ;;  %v2306_v23 = vadd.f32 %v2305_v49, %v2159_v30 }
 0x523   :  { %v2224_v21 = vadd.f32 %v2223_v25, %v2097_v46  ;;  %v2285_v25 = vadd.f32 %v4165_v7, %v2143_v53  ;;  %v2819_v53 = vld [vmem:[#allocation2 + $0x360] sm:$0xff] }
 0x524   :  { %v1806_v35 = vpop.permute.xlu1 %1805  ;;  %v1743_v47 = vpop.permute.xlu0 %1742 }
 0x525   :  { %v2129_v37 = vmul.f32 %v2799_v39, %v1743_v47 }
 0x527   :  { %v2266_v33 = vadd.f32 %v2265_v0, %v2129_v37  ;;  %v2812_v37 = vld [vmem:[#allocation2 + $0x270] sm:$0xff] }
 0x528   :  { %v4179_v57 = vpop.permute.xlu1 %2065  ;;  %v4181_v45 = vpop.permute.xlu0 %2002 }
 0x529   :  { %v2191_v36 = vmul.f32 %v2819_v53, %v4181_v45 }
 0x52c   :  { %v1873_v61 = vpop.permute.xlu1 %1872  ;;  %v1680_v29 = vpop.permute.xlu0 %1679 }
 0x52d   :  { %v2114_v26 = vmul.f32 %v2797_v17, %v1680_v29  ;;  %v2806_v29 = vld [vmem:[#allocation2 + $0x2d8] sm:$0xff]  ;;  %v2160_v46 = vmul.f32 %v2808_v14, %v1873_v61  ;;  %v2325_v17 = vadd.f32 %v4153_v12, %v2173_v54 }
 0x52e   :  { %v2174_v16 = vmul.f32 %v2806_v29, %v4171_v56  ;;  %v2811_v56 = vld [vmem:[#allocation2 + $0x350] sm:$0xff]  ;;  %v2816_v54 = vld [vmem:[#allocation2 + $0x1f8] sm:$0xff] }
 0x52f   :  { %v2246_v13 = vadd.f32 %v2245_v24, %v2114_v26  ;;  %v2807_v24 = vld [vmem:[#allocation2 + $0x1e8] sm:$0xff]  ;;  %v2307_v0 = vadd.f32 %v2306_v23, %v2160_v46  ;;  %v2820_v29 = vld [vmem:[#allocation2 + $0x3d0] sm:$0xff] }
 0x530   :  { %v1613_v55 = vpop.permute.xlu1 %1612  ;;  %v4184_v59 = vpop.permute.xlu0 %1939  ;;  %v2144_v1 = vmul.f32 %v2807_v24, %v1806_v35  ;;  %v2189_v35 = vmul.f32 %v2811_v56, %v4169_v11  ;;  %v2815_v11 = vld [vmem:[#allocation2 + $0x2f0] sm:$0xff] }
 0x531   :  { %v2247_v58 = vrot.slane %v2246_v13, 4  ;;  %v2098_v4 = vmul.f32 %v2800_v18, %v1613_v55  ;;  %v2813_v18 = vld [vmem:[#allocation2 + $0x358] sm:$0xff] }
 0x532   :  { %v2286_v7 = vadd.f32 %v2285_v25, %v2144_v1  ;;  %v2821_v1 = vld [vmem:[#allocation2 + $0x368] sm:$0xff]  ;;  %v2823_v25 = vld [vmem:[#allocation2 + $0x3d8] sm:$0xff] }
 0x533   :  { %v2248_v41 = vadd.f32 %v2247_v58, %v2246_v13  ;;  %v2225_v20 = vadd.f32 %v2224_v21, %v2098_v4  ;;  %v2175_v13 = vmul.f32 %v2809_v60, %v4177_v8  ;;  %v2326_v58 = vadd.f32 %v2325_v17, %v2174_v16  ;;  %v2814_v8 = vld [vmem:[#allocation2 + $0x2e8] sm:$0xff] }
 0x534   :  { %v1810_v52 = vpop.permute.xlu1 %1809  ;;  %v1747_v43 = vpop.permute.xlu0 %1746  ;;  %v2190_v4 = vmul.f32 %v2813_v18, %v4175_v6  ;;  %v2205_v16 = vmul.f32 %v2820_v29, %v4173_v42  ;;  %v2206_v23 = vmul.f32 %v2823_v25, %v4179_v57  ;;  %v2826_v57 = vld [vmem:[#allocation2 + $0x3e8] sm:$0xff] }
 0x535   :  { %v2249_v63 = vrot.slane %v2248_v41, 2  ;;  %v2226_v28 = vrot.slane %v2225_v20, 4  ;;  %v2130_v51 = vmul.f32 %v2801_v19, %v1747_v43  ;;  %v2145_v38 = vmul.f32 %v2810_v48, %v1810_v52 }
 0x536   :  { %v2176_v52 = vmul.f32 %v2814_v8, %v4184_v59  ;;  %v2346_v59 = vadd.f32 %v4159_v40, %v2189_v35  ;;  %v2822_v40 = vld [vmem:[#allocation2 + $0x2f8] sm:$0xff] }
 0x537   :  { %v2250_v22 = vadd.f32 %v2249_v63, %v2248_v41  ;;  %v2227_v31 = vadd.f32 %v2226_v28, %v2225_v20  ;;  %v2267_v47 = vadd.f32 %v2266_v33, %v2130_v51  ;;  %v2327_v33 = vadd.f32 %v2326_v58, %v2175_v13 }
 0x538   :  { %v4187_v3 = vpop.permute.xlu1 %2069  ;;  %v4189_v32 = vpop.permute.xlu0 %2006  ;;  %v2287_v63 = vadd.f32 %v2286_v7, %v2145_v38  ;;  %v2347_v24 = vadd.f32 %v2346_v59, %v2190_v4  ;;  %v2827_v7 = vld [vmem:[#allocation2 + $0x378] sm:$0xff] }
 0x539   :  { %v2228_v9 = vrot.slane %v2227_v31, 2  ;;  %v2268_v27 = vrot.slane %v2267_v47, 4  ;;  %v2251_v10 = vrot.slane %v2250_v22, 1  ;;  %v2328_v30 = vadd.f32 %v2327_v33, %v2176_v52  ;;  %v2829_v59 = vld [vmem:[#allocation2 + $0x3f8] sm:$0xff] }
 0x53a   :  { %v2192_v14 = vmul.f32 %v2821_v1, %v4189_v32  ;;  %v2348_v60 = vadd.f32 %v2347_v24, %v2191_v36  ;;  %v2824_v32 = vld [vmem:[#allocation2 + $0x3e0] sm:$0xff] }
 0x53b   :  { %v2229_v26 = vadd.f32 %v2228_v9, %v2227_v31  ;;  %v2269_v15 = vadd.f32 %v2268_v27, %v2267_v47  ;;  %v2252_v41 = vadd.f32 %v2251_v10, %v2250_v22  ;;  %v2817_v31 = vld [vmem:[#allocation2 + $0x278] sm:$0xff]  ;;  %v2818_v22 = vld [vmem:[#allocation2 + $0x3c8] sm:$0xff] }
 0x53c   :  { %v1877_v55 = vpop.permute.xlu1 %1876  ;;  %v1944_v21 = vpop.permute.xlu0 %1943  ;;  %v2204_v50 = vmul.f32 %v2818_v22, %v4167_v34  ;;  %v2349_v56 = vadd.f32 %v2348_v60, %v2192_v14 }
 0x53d   :  { %v2230_v39 = vrot.slane %v2229_v26, 1  ;;  %v2270_v61 = vrot.slane %v2269_v15, 2  ;;  %v2161_v12 = vmul.f32 %v2812_v37, %v1877_v55  ;;  %v2177_v19 = vmul.f32 %v2815_v11, %v1944_v21 }
 0x53e   :  { %v2366_v45 = vadd.f32 %v4157_v62, %v2204_v50  ;;  %v2207_v21 = vmul.f32 %v2824_v32, %v4187_v3  ;;  %v2825_v62 = vld [vmem:[#allocation2 + $0x370] sm:$0xff] }
 0x53f   :  { %v2231_v20 = vadd.f32 %v2230_v39, %v2229_v26  ;;  %v2271_v43 = vadd.f32 %v2270_v61, %v2269_v15  ;;  %v2308_v28 = vadd.f32 %v2307_v0, %v2161_v12  ;;  %v2329_v10 = vadd.f32 %v2328_v30, %v2177_v19 }
 0x540   :  { %v1814_v51 = vpop.permute.xlu1 %1813  ;;  %v1881_v44 = vpop.permute.xlu0 %1880  ;;  %v2367_v55 = vadd.f32 %v2366_v45, %v2205_v16 }
 0x541   :  { %v2387_v2 = vsel %vm4285_vm8, %v2252_v41, %v2231_v20  ;;  %v2272_v5 = vrot.slane %v2271_v43, 1  ;;  %v2146_v6 = vmul.f32 %v2816_v54, %v1814_v51  ;;  %v2162_v47 = vmul.f32 %v2817_v31, %v1881_v44  ;;  %v2828_v51 = vld [vmem:[#allocation2 + $0x3f0] sm:$0xff] }
 0x542   :  { %v2368_v18 = vadd.f32 %v2367_v55, %v2206_v23 }
 0x543   :  { %v2273_v9 = vadd.f32 %v2272_v5, %v2271_v43  ;;  %v2288_v27 = vadd.f32 %v2287_v63, %v2146_v6  ;;  %v2309_v49 = vadd.f32 %v2308_v28, %v2162_v47 }
 0x544   :  { %v2074_v46 = vpop.permute.xlu1 %2073  ;;  %v1948_v17 = vpop.permute.xlu0 %1947  ;;  %v2369_v43 = vadd.f32 %v2368_v18, %v2207_v21 }
 0x545   :  { %v2289_v34 = vrot.slane %v2288_v27, 4  ;;  %v2310_v26 = vrot.slane %v2309_v49, 4  ;;  %v2178_v15 = vmul.f32 %v2822_v40, %v1948_v17  ;;  %v2388_v13 = vsel %vm4286_vm9, %v2273_v9, %v2387_v2 }
 0x546   :  { %v2208_v4 = vmul.f32 %v2826_v57, %v2074_v46 }
 0x547   :  { %v2290_v42 = vadd.f32 %v2289_v34, %v2288_v27  ;;  %v2311_v48 = vadd.f32 %v2310_v26, %v2309_v49  ;;  %v2330_v38 = vadd.f32 %v2329_v10, %v2178_v15 }
 0x548   :  { %v2011_v35 = vpop.permute.xlu1 %2010  ;;  %v2015_v39 = vpop.permute.xlu0 %2014  ;;  %v2370_v19 = vadd.f32 %v2369_v43, %v2208_v4 }
 0x549   :  { %v2291_v61 = vrot.slane %v2290_v42, 2  ;;  %v2312_v37 = vrot.slane %v2311_v48, 2  ;;  %v2331_v12 = vrot.slane %v2330_v38, 4  ;;  %v2193_v58 = vmul.f32 %v2825_v62, %v2011_v35 }
 0x54a   :  { %v2194_v0 = vmul.f32 %v2827_v7, %v2015_v39 }
 0x54b   :  { %v2292_v41 = vadd.f32 %v2291_v61, %v2290_v42  ;;  %v2313_v20 = vadd.f32 %v2312_v37, %v2311_v48  ;;  %v2332_v8 = vadd.f32 %v2331_v12, %v2330_v38  ;;  %v2350_v52 = vadd.f32 %v2349_v56, %v2193_v58 }
 0x54c   :  { %v2078_v33 = vpop.permute.xlu1 %2077 }
 0x54d   :  { %v2293_v3 = vrot.slane %v2292_v41, 1  ;;  %v2314_v63 = vrot.slane %v2313_v20, 1  ;;  %v2333_v28 = vrot.slane %v2332_v8, 2  ;;  %v2351_v11 = vadd.f32 %v2350_v52, %v2194_v0 }
 0x54e   :  { %v2209_v44 = vmul.f32 %v2828_v51, %v2078_v33 }
 0x54f   :  { %v2294_v2 = vadd.f32 %v2293_v3, %v2292_v41  ;;  %v2315_v5 = vadd.f32 %v2314_v63, %v2313_v20  ;;  %v2334_v54 = vadd.f32 %v2333_v28, %v2332_v8  ;;  %v2352_v6 = vrot.slane %v2351_v11, 4 }
 0x550   :  { %v2371_v31 = vadd.f32 %v2370_v19, %v2209_v44  ;;  %v2082_v47 = vpop.permute.xlu1 %2081 }
 0x551   :  { %v2335_v22 = vrot.slane %v2334_v54, 1  ;;  %v2353_v50 = vadd.f32 %v2352_v6, %v2351_v11  ;;  %v2210_v53 = vmul.f32 %v2829_v59, %v2082_v47  ;;  %v2389_v36 = vsel %vm1526_vm0, %v2294_v2, %v2388_v13 }
 0x552   :  { %v2390_v30 = vsel %vm1528_vm12, %v2315_v5, %v2389_v36 }
 0x553   :  { %v2336_v9 = vadd.f32 %v2335_v22, %v2334_v54  ;;  %v2354_v27 = vrot.slane %v2353_v50, 2  ;;  %v2372_v49 = vadd.f32 %v2371_v31, %v2210_v53 }
 0x555   :  { %v2355_v29 = vadd.f32 %v2354_v27, %v2353_v50  ;;  %v2373_v16 = vrot.slane %v2372_v49, 4  ;;  %v2391_v24 = vsel %vm1530_vm3, %v2336_v9, %v2390_v30 }
 0x557   :  { %v2356_v1 = vrot.slane %v2355_v29, 1  ;;  %v2374_v14 = vadd.f32 %v2373_v16, %v2372_v49 }
 0x559   :  { %v2375_v46 = vrot.slane %v2374_v14, 2  ;;  %v2357_v17 = vadd.f32 %v2356_v1, %v2355_v29 }
 0x55b   :  { %v2376_v10 = vadd.f32 %v2375_v46, %v2374_v14  ;;  %v2392_v34 = vsel %vm1532_vm5, %v2357_v17, %v2391_v24 }
 0x55d   :  { %v2377_v26 = vrot.slane %v2376_v10, 1 }
 0x55f   :  { %v2378_v40 = vadd.f32 %v2377_v26, %v2376_v10 }
 0x561   :  { %v2393_v15 = vsel %vm1534_vm6, %v2378_v40, %v2392_v34 }
 0x562   :  { %2492 = vmatmul.mubr.f32.vlgmr.msra.gmra.mrb[0].mxu1 %v2393_v15  ;;  %2500 = vst [vmem:[#allocation8] sm:$0xff] %v2393_v15 }
 0x563   :  { %2863 = shalt.err (!%p2860_p12)
}
 0x564   :  { %s2864_s13 = scalar_lea.hbm %s4256_s6, 128 }
 0x565   :  { %p2865_p13 = scmp.ne.s32.totalorder %s4256_s6, %s2864_s13  ;;  %p2868_p0 = scmp.lt.u32.totalorder %s2864_s13, %s4256_s6 }
 0x567   :  { %p2870_p1 = pnand %p2868_p0, %p2865_p13 }
 0x569   :  { %2873 = shalt.err (!%p2870_p1)
}
 0x56a   :  { %2520 = dma.vmem_to_hbm [thread:$0]  %s2518_s10, 128, %s4256_s6, [#allocation7]  }
 0x56b   :  { %s2932_s20 = smov [#allocation8]  }
 0x56c   :  { %s2527_s1 = sshll.u32 %s2932_s20, 4  ;;  %s2528_s1 = int_to_ptr.vmem [resolvable:$true] %s2527_s1 }
 0x56d   :  { %s2874_s21 = scalar_lea.vmem %s2528_s1, 128  ;;  %p2879_p3 = scmp.lt.s32.totalorder %s2528_s1, %s2528_s1 }
 0x56e   :  { %p2875_p2 = scmp.ne.s32.totalorder %s2528_s1, %s2874_s21  ;;  %p2880_p4 = scmp.lt.s32.totalorder %s2874_s21, %s2874_s21 }
 0x570   :  { %p2881_p5 = por %p2880_p4, %p2879_p3 }
 0x572   :  { %p2882_p6 = pnand %p2881_p5, %p2875_p2 }
 0x574   :  { %2885 = shalt.err (!%p2882_p6)
}
 0x575   :  { %s2886_s23 = scalar_lea.hbm %s4257_s7, 128 }
 0x576   :  { %p2887_p7 = scmp.ne.s32.totalorder %s4257_s7, %s2886_s23  ;;  %p2890_p8 = scmp.lt.u32.totalorder %s2886_s23, %s4257_s7 }
 0x578   :  { %p2892_p9 = pnand %p2890_p8, %p2887_p7 }
 0x57a   :  { %2895 = shalt.err (!%p2892_p9)
}
 0x57b   :  { %2530 = dma.vmem_to_hbm [thread:$0]  %s2528_s1, 128, %s4257_s7, [#allocation7]  }
 0x57c   :  { %s2933_s28 = smov [#allocation5]  }
 0x57d   :  { %s2507_s29 = sshll.u32 %s2933_s28, 4  ;;  %s2508_s29 = int_to_ptr.vmem [resolvable:$true] %s2507_s29 }
 0x57e   :  { %s2896_s30 = scalar_lea.vmem %s2508_s29, 128  ;;  %p2901_p11 = scmp.lt.s32.totalorder %s2508_s29, %s2508_s29 }
 0x57f   :  { %p2897_p10 = scmp.ne.s32.totalorder %s2508_s29, %s2896_s30  ;;  %p2902_p12 = scmp.lt.s32.totalorder %s2896_s30, %s2896_s30 }
 0x581   :  { %p2903_p13 = por %p2902_p12, %p2901_p11 }
 0x583   :  { %p2904_p0 = pnand %p2903_p13, %p2897_p10 }
 0x635   :  { %v2592_v45 = vpop.f32.mrb[0].mxu1 }
 0x636   :  { %v2593_v25 = vpop.f32.mrb[1].mxu1 }
 0x637   :  { %v2594_v23 = vadd.f32 %v2593_v25, %v2592_v45 }
 0x639   :  { %2700 = vtanh.f32 %v2594_v23 }
 0x643   :  { %v2701_v60 = vpop.eup %2700 }
 0x644   :  { %2498 = vst [vmem:[#allocation5] sm:$0xff] %v2701_v60 }
 0x645   :  { %2907 = shalt.err (!%p2904_p0)
}
 0x646   :  { %s2908_s7 = scalar_lea.hbm %s4255_s5, 128 }
 0x647   :  { %p2909_p1 = scmp.ne.s32.totalorder %s4255_s5, %s2908_s7  ;;  %p2912_p2 = scmp.lt.u32.totalorder %s2908_s7, %s4255_s5 }
 0x649   :  { %p2914_p3 = pnand %p2912_p2, %p2909_p1 }
 0x64b   :  { %2917 = shalt.err (!%p2914_p3)
}
 0x64c   :  { %2510 = dma.vmem_to_hbm [thread:$0]  %s2508_s29, 128, %s4255_s5, [#allocation4]  }
 0x64d   :  { %2920 = dma.done.wait [#allocation4], 128  }
 0x64e   :  { %2921 = vsyncadd [#allocation4], 4294967168 }
 0x64f   :  { %2922 = dma.done.wait [#allocation7], 256  }
 0x650   :  { %2923 = vsyncadd [#allocation7], 4294967040 }
 0x651   :  { %2540 = vsyncpa [#allocation3], 1 }
 0x652   :  { %2541 = vsyncpa [#allocation4], 1 }
 0x653   :  { %2542 = vsyncpa [#allocation7], 1 }

</bundles_post_ra>
